<compile_context>
chip_gen: v5e
topology: v5e:2x2
jax: 0.10.0
libtpu: 0.0.40
codegen_flags: <defaults>
</compile_context>

<pallas_src>
import functools

import jax
import jax.numpy as jnp
import numpy as np
from jax.experimental import pallas as pl
from jax.experimental.pallas import tpu as pltpu


def _round_up(x, m):
    return ((x + m - 1) // m) * m


def residual_stack_kernel(x_ref, w1_ref, w2_ref, cm_ref, o_ref, ap_ref, pat_ref,
                          *, n_layers, W, G):
    # x_ref:   (1, Cp, HW)   f32  one image, channels-first, spatial flattened
    # w1_ref:  (Cmid, 9*Cp)  bf16 3x3 conv weights, im2col layout (kh,kw outer, cin inner)
    # w2_ref:  (Cp, Cmid)    bf16 1x1 conv weights
    # cm_ref:  (2, HW)       f32  output-aligned W-boundary masks (dx=-1, dx=+1 taps)
    # o_ref:   (1, Cp, HW)   f32  padded-channel output (sliced to C in the wrapper)
    # ap_ref:  (Cp, NP)      f32  persistent zero-guarded flat activation scratch
    # pat_ref: (9*Cp, HW)    bf16 persistent im2col patch scratch
    Cp = x_ref.shape[1]
    HW = x_ref.shape[2]

    w1 = w1_ref[...]                         # (Cmid, 9*Cp) bf16
    w2 = w2_ref[...]                         # (Cp, Cmid)   bf16
    mL = cm_ref[0:1, :]                      # (1, HW): zero where output col == 0   (dx=-1)
    mR = cm_ref[1:2, :]                      # (1, HW): zero where output col == W-1 (dx=+1)

    # Guard columns zeroed once per image; the layer loop only ever writes the
    # [G, G+HW) image region, so the dy = +-1 halo stays zero across layers.
    ap_ref[:, :G] = jnp.zeros((Cp, G), jnp.float32)
    ap_ref[:, G + HW:] = jnp.zeros((Cp, G), jnp.float32)

    inter = x_ref[0]                         # (Cp, HW) f32 running (un-ReLU'd) activation

    # TODO(synk): switch to lax.fori_loop with `inter` in a VMEM scratch if
    # n_res_layers grows beyond ~4 (bounds live ranges of per-layer temporaries).
    for _ in range(n_layers):                # weights shared across layers ([layer]*n in torch)
        a = jnp.maximum(inter, 0.0)          # first ReLU, kept f32 (v5e has no bf16 VPU)
        ap_ref[:, G:G + HW] = a              # lane-aligned store of the image region only

        # im2col: 9 shifted taps written straight into the bf16 patch scratch.
        # Boundary (dx = +-1) taps masked in f32, cast per-tap before the store.
        for dy in (-1, 0, 1):
            base = G + dy * W
            r = ((dy + 1) * 3) * Cp          # row block for (kh = dy+1, kw = 0)
            pat_ref[r:r + Cp, :] = (
                ap_ref[:, base - 1:base - 1 + HW] * mL).astype(jnp.bfloat16)
            if dy == 0:
                pat_ref[r + Cp:r + 2 * Cp, :] = a.astype(jnp.bfloat16)
            else:
                pat_ref[r + Cp:r + 2 * Cp, :] = (
                    ap_ref[:, base:base + HW]).astype(jnp.bfloat16)
            pat_ref[r + 2 * Cp:r + 3 * Cp, :] = (
                ap_ref[:, base + 1:base + 1 + HW] * mR).astype(jnp.bfloat16)

        # 3x3 conv as one MXU matmul, ReLU, then 1x1 conv as a second matmul.
        h = jnp.dot(w1, pat_ref[...], preferred_element_type=jnp.float32)  # (Cmid, HW) f32
        h = jnp.maximum(h, 0.0).astype(jnp.bfloat16)
        y = jnp.dot(w2, h, preferred_element_type=jnp.float32)             # (Cp, HW) f32

        inter = inter + y                    # residual add (f32)

    # Final stack ReLU; full padded-channel (unmasked) store, sliced in wrapper.
    o_ref[0] = jnp.maximum(inter, 0.0)


def residual_stack_forward(x_nchw, w1_t, w2_t, n_res_layers):
    """x_nchw: (N, C, H, W) f32.  PyTorch conv weights:
       w1_t: (res_h_dim, C, 3, 3), w2_t: (C, res_h_dim, 1, 1), both bias-free."""
    N, C, H, W = x_nchw.shape
    Cmid = w1_t.shape[0]
    assert w1_t.shape == (Cmid, C, 3, 3)
    assert w2_t.shape[:2] == (C, Cmid), "residual add requires h_dim == in_dim"

    HW = H * W
    Cp = _round_up(C, 8)                     # pad channels to the f32 sublane tile
    G = _round_up(max(W + 1, 128), 128)      # lane-aligned zero guard, >= W+1
    NP = HW + 2 * G

    # Free layout change: NCHW -> (N, C, H*W); pad channels with zero rows.
    x2 = x_nchw.reshape(N, C, HW).astype(jnp.float32)
    if Cp != C:
        x2 = jnp.pad(x2, ((0, 0), (0, Cp - C), (0, 0)))

    # PyTorch Conv2d is cross-correlation: out[o,y,x] = sum w[o,c,kh,kw]*in[c,y+kh-1,x+kw-1].
    # im2col weight layout: column = (kh*3 + kw)*Cp + c.
    w1r = jnp.transpose(w1_t, (0, 2, 3, 1))  # (Cmid, 3, 3, C)
    if Cp != C:
        w1r = jnp.pad(w1r, ((0, 0), (0, 0), (0, 0), (0, Cp - C)))
    w1f = w1r.reshape(Cmid, 9 * Cp).astype(jnp.bfloat16)

    w2m = w2_t[:, :, 0, 0]                   # (C, Cmid)
    if Cp != C:
        w2m = jnp.pad(w2m, ((0, Cp - C), (0, 0)))
    w2m = w2m.astype(jnp.bfloat16)           # (Cp, Cmid)

    # Output-aligned W-boundary masks: a dx=-1 tap is invalid at output col 0,
    # a dx=+1 tap is invalid at output col W-1 (they'd wrap to the adjacent row).
    col = np.arange(HW) % W
    colmask = jnp.asarray(np.stack([
        (col != 0).astype(np.float32),       # for dx = -1 taps
        (col != W - 1).astype(np.float32),   # for dx = +1 taps
    ]))                                      # (2, HW)

    kernel = functools.partial(residual_stack_kernel,
                               n_layers=n_res_layers, W=W, G=G)

    out2 = pl.pallas_call(
        kernel,
        out_shape=jax.ShapeDtypeStruct((N, Cp, HW), jnp.float32),
        grid_spec=pltpu.PrefetchScalarGridSpec(
            num_scalar_prefetch=0,
            grid=(N,),
            in_specs=[
                pl.BlockSpec((1, Cp, HW), lambda n: (n, 0, 0)),
                pl.BlockSpec((Cmid, 9 * Cp), lambda n: (0, 0)),
                pl.BlockSpec((Cp, Cmid), lambda n: (0, 0)),
                pl.BlockSpec((2, HW), lambda n: (0, 0)),
            ],
            out_specs=pl.BlockSpec((1, Cp, HW), lambda n: (n, 0, 0)),
            scratch_shapes=[
                pltpu.VMEM((Cp, NP), jnp.float32),      # guarded flat activation
                pltpu.VMEM((9 * Cp, HW), jnp.bfloat16), # im2col patches
            ],
        ),
        compiler_params=pltpu.CompilerParams(
            dimension_semantics=("parallel",),
            vmem_limit_bytes=32 * 1024 * 1024,
        ),
    )(x2, w1f, w2m, colmask)

    # Drop the zero-padded channel rows (free XLA slice) and restore NCHW.
    return out2[:, :C, :].reshape(N, C, H, W)


def residual_stack_reference(x, w1, w2, n_layers):
    """Pure-JAX f32 reference matching the PyTorch ResidualStack (shared weights)."""
    for _ in range(n_layers):
        a = jnp.maximum(x, 0.0)
        h = jax.lax.conv_general_dilated(
            a, w1, window_strides=(1, 1), padding=((1, 1), (1, 1)),
            dimension_numbers=("NCHW", "OIHW", "NCHW"),
            precision=jax.lax.Precision.HIGHEST)
        h = jnp.maximum(h, 0.0)
        z = jax.lax.conv_general_dilated(
            h, w2, window_strides=(1, 1), padding=((0, 0), (0, 0)),
            dimension_numbers=("NCHW", "OIHW", "NCHW"),
            precision=jax.lax.Precision.HIGHEST)
        x = x + z
    return jnp.maximum(x, 0.0)


if __name__ == "__main__":
    # ResidualStack(in_dim=4, h_dim=4, res_h_dim=8, n_res_layers=3); residual add
    # requires in_dim == h_dim. Convs are bias-free per the spec.
    N, C, H, W = 2, 4, 16, 16
    Cmid = 8
    n_res_layers = 3

    key = jax.random.PRNGKey(0)
    kx, k1, k2 = jax.random.split(key, 3)
    x = jax.random.normal(kx, (N, C, H, W), dtype=jnp.float32)
    w1 = 0.1 * jax.random.normal(k1, (Cmid, C, 3, 3), dtype=jnp.float32)
    w2 = 0.1 * jax.random.normal(k2, (C, Cmid, 1, 1), dtype=jnp.float32)

    out = residual_stack_forward(x, w1, w2, n_res_layers)
    out = jax.block_until_ready(out)

    ref = residual_stack_reference(x, w1, w2, n_res_layers)
    assert out.shape == (N, C, H, W)
    max_err = float(jnp.max(jnp.abs(out - ref)))
    assert jnp.allclose(out, ref, atol=1e-2, rtol=1e-2), (
        f"mismatch vs reference, max abs err {max_err}")

    print("KERNEL_OK")
</pallas_src>

<mosaic_0001>
module attributes {stable_mosaic.version = 11 : i64} {
  func.func @residual_stack_kernel(%arg0: i32, %arg1: memref<1x8x256xf32, #tpu.memory_space<vmem>>, %arg2: memref<8x72xbf16, #tpu.memory_space<vmem>>, %arg3: memref<8x8xbf16, #tpu.memory_space<vmem>>, %arg4: memref<2x256xf32, #tpu.memory_space<vmem>>, %arg5: memref<1x8x256xf32, #tpu.memory_space<vmem>>, %arg6: memref<8x512xf32, #tpu.memory_space<vmem>>, %arg7: memref<72x256xbf16, #tpu.memory_space<vmem>>) attributes {dimension_semantics = [#tpu.dimension_semantics<parallel>], iteration_bounds = array<i64: 2>, scalar_prefetch = 0 : i64, scratch_operands = 2 : i64, tpu.core_type = #tpu.core_type<tc>, window_params = [{transform_indices = @transform_0, window_bounds = array<i64: 1, 8, 256>}, {pipeline_mode = #tpu.pipeline_mode<synchronous>, transform_indices = @transform_1, window_bounds = array<i64: 8, 72>}, {pipeline_mode = #tpu.pipeline_mode<synchronous>, transform_indices = @transform_2, window_bounds = array<i64: 8, 8>}, {pipeline_mode = #tpu.pipeline_mode<synchronous>, transform_indices = @transform_3, window_bounds = array<i64: 2, 256>}, {transform_indices = @transform_4, window_bounds = array<i64: 1, 8, 256>}]} {
    %c0 = arith.constant 0 : index
    %c0_0 = arith.constant 0 : index
    %0 = vector.load %arg2[%c0, %c0_0] : memref<8x72xbf16, #tpu.memory_space<vmem>>, vector<8x72xbf16>
    %c0_1 = arith.constant 0 : index
    %c0_2 = arith.constant 0 : index
    %1 = vector.load %arg3[%c0_1, %c0_2] : memref<8x8xbf16, #tpu.memory_space<vmem>>, vector<8x8xbf16>
    %c0_3 = arith.constant 0 : index
    %c0_4 = arith.constant 0 : index
    %2 = vector.load %arg4[%c0_3, %c0_4] : memref<2x256xf32, #tpu.memory_space<vmem>>, vector<1x256xf32>
    %c1 = arith.constant 1 : index
    %c0_5 = arith.constant 0 : index
    %3 = vector.load %arg4[%c1, %c0_5] : memref<2x256xf32, #tpu.memory_space<vmem>>, vector<1x256xf32>
    %cst = arith.constant 0.000000e+00 : f32
    %4 = vector.broadcast %cst : f32 to vector<8x128xf32>
    %c0_6 = arith.constant 0 : index
    %c0_7 = arith.constant 0 : index
    %5 = vector.load %arg6[%c0_6, %c0_7] : memref<8x512xf32, #tpu.memory_space<vmem>>, vector<8x128xf32>
    tpu.vector_store %arg6[%c0_6, %c0_7], %4 {strides = array<i32>} : memref<8x512xf32, #tpu.memory_space<vmem>>, vector<8x128xf32>,
    %cst_8 = arith.constant 0.000000e+00 : f32
    %6 = vector.broadcast %cst_8 : f32 to vector<8x128xf32>
    %c0_9 = arith.constant 0 : index
    %c384 = arith.constant 384 : index
    %7 = vector.load %arg6[%c0_9, %c384] : memref<8x512xf32, #tpu.memory_space<vmem>>, vector<8x128xf32>
    tpu.vector_store %arg6[%c0_9, %c384], %6 {strides = array<i32>} : memref<8x512xf32, #tpu.memory_space<vmem>>, vector<8x128xf32>,
    %c0_10 = arith.constant 0 : index
    %c0_11 = arith.constant 0 : index
    %c0_12 = arith.constant 0 : index
    %8 = vector.load %arg1[%c0_10, %c0_11, %c0_12] : memref<1x8x256xf32, #tpu.memory_space<vmem>>, vector<1x8x256xf32>
    %9 = vector.shape_cast %8 : vector<1x8x256xf32> to vector<8x256xf32>
    %cst_13 = arith.constant 0.000000e+00 : f32
    %10 = vector.broadcast %cst_13 : f32 to vector<8x256xf32>
    %11 = arith.maximumf %9, %10 : vector<8x256xf32>
    %c0_14 = arith.constant 0 : index
    %c128 = arith.constant 128 : index
    %12 = vector.load %arg6[%c0_14, %c128] : memref<8x512xf32, #tpu.memory_space<vmem>>, vector<8x256xf32>
    tpu.vector_store %arg6[%c0_14, %c128], %11 {strides = array<i32>} : memref<8x512xf32, #tpu.memory_space<vmem>>, vector<8x256xf32>,
    %c0_15 = arith.constant 0 : index
    %c111 = arith.constant 111 : index
    %13 = vector.load %arg6[%c0_15, %c111] : memref<8x512xf32, #tpu.memory_space<vmem>>, vector<8x256xf32>
    %14 = vector.broadcast %2 : vector<1x256xf32> to vector<8x256xf32>
    %15 = arith.mulf %13, %14 : vector<8x256xf32>
    %16 = arith.truncf %15 : vector<8x256xf32> to vector<8x256xbf16>
    %c0_16 = arith.constant 0 : index
    %c0_17 = arith.constant 0 : index
    %17 = vector.load %arg7[%c0_16, %c0_17] : memref<72x256xbf16, #tpu.memory_space<vmem>>, vector<8x256xbf16>
    tpu.vector_store %arg7[%c0_16, %c0_17], %16 {strides = array<i32>} : memref<72x256xbf16, #tpu.memory_space<vmem>>, vector<8x256xbf16>,
    %c0_18 = arith.constant 0 : index
    %c112 = arith.constant 112 : index
    %18 = vector.load %arg6[%c0_18, %c112] : memref<8x512xf32, #tpu.memory_space<vmem>>, vector<8x256xf32>
    %19 = arith.truncf %18 : vector<8x256xf32> to vector<8x256xbf16>
    %c8 = arith.constant 8 : index
    %c0_19 = arith.constant 0 : index
    %20 = vector.load %arg7[%c8, %c0_19] : memref<72x256xbf16, #tpu.memory_space<vmem>>, vector<8x256xbf16>
    tpu.vector_store %arg7[%c8, %c0_19], %19 {strides = array<i32>} : memref<72x256xbf16, #tpu.memory_space<vmem>>, vector<8x256xbf16>,
    %c0_20 = arith.constant 0 : index
    %c113 = arith.constant 113 : index
    %21 = vector.load %arg6[%c0_20, %c113] : memref<8x512xf32, #tpu.memory_space<vmem>>, vector<8x256xf32>
    %22 = vector.broadcast %3 : vector<1x256xf32> to vector<8x256xf32>
    %23 = arith.mulf %21, %22 : vector<8x256xf32>
    %24 = arith.truncf %23 : vector<8x256xf32> to vector<8x256xbf16>
    %c16 = arith.constant 16 : index
    %c0_21 = arith.constant 0 : index
    %25 = vector.load %arg7[%c16, %c0_21] : memref<72x256xbf16, #tpu.memory_space<vmem>>, vector<8x256xbf16>
    tpu.vector_store %arg7[%c16, %c0_21], %24 {strides = array<i32>} : memref<72x256xbf16, #tpu.memory_space<vmem>>, vector<8x256xbf16>,
    %c0_22 = arith.constant 0 : index
    %c127 = arith.constant 127 : index
    %26 = vector.load %arg6[%c0_22, %c127] : memref<8x512xf32, #tpu.memory_space<vmem>>, vector<8x256xf32>
    %27 = vector.broadcast %2 : vector<1x256xf32> to vector<8x256xf32>
    %28 = arith.mulf %26, %27 : vector<8x256xf32>
    %29 = arith.truncf %28 : vector<8x256xf32> to vector<8x256xbf16>
    %c24 = arith.constant 24 : index
    %c0_23 = arith.constant 0 : index
    %30 = vector.load %arg7[%c24, %c0_23] : memref<72x256xbf16, #tpu.memory_space<vmem>>, vector<8x256xbf16>
    tpu.vector_store %arg7[%c24, %c0_23], %29 {strides = array<i32>} : memref<72x256xbf16, #tpu.memory_space<vmem>>, vector<8x256xbf16>,
    %31 = arith.truncf %11 : vector<8x256xf32> to vector<8x256xbf16>
    %c32 = arith.constant 32 : index
    %c0_24 = arith.constant 0 : index
    %32 = vector.load %arg7[%c32, %c0_24] : memref<72x256xbf16, #tpu.memory_space<vmem>>, vector<8x256xbf16>
    tpu.vector_store %arg7[%c32, %c0_24], %31 {strides = array<i32>} : memref<72x256xbf16, #tpu.memory_space<vmem>>, vector<8x256xbf16>,
    %c0_25 = arith.constant 0 : index
    %c129 = arith.constant 129 : index
    %33 = vector.load %arg6[%c0_25, %c129] : memref<8x512xf32, #tpu.memory_space<vmem>>, vector<8x256xf32>
    %34 = vector.broadcast %3 : vector<1x256xf32> to vector<8x256xf32>
    %35 = arith.mulf %33, %34 : vector<8x256xf32>
    %36 = arith.truncf %35 : vector<8x256xf32> to vector<8x256xbf16>
    %c40 = arith.constant 40 : index
    %c0_26 = arith.constant 0 : index
    %37 = vector.load %arg7[%c40, %c0_26] : memref<72x256xbf16, #tpu.memory_space<vmem>>, vector<8x256xbf16>
    tpu.vector_store %arg7[%c40, %c0_26], %36 {strides = array<i32>} : memref<72x256xbf16, #tpu.memory_space<vmem>>, vector<8x256xbf16>,
    %c0_27 = arith.constant 0 : index
    %c143 = arith.constant 143 : index
    %38 = vector.load %arg6[%c0_27, %c143] : memref<8x512xf32, #tpu.memory_space<vmem>>, vector<8x256xf32>
    %39 = vector.broadcast %2 : vector<1x256xf32> to vector<8x256xf32>
    %40 = arith.mulf %38, %39 : vector<8x256xf32>
    %41 = arith.truncf %40 : vector<8x256xf32> to vector<8x256xbf16>
    %c48 = arith.constant 48 : index
    %c0_28 = arith.constant 0 : index
    %42 = vector.load %arg7[%c48, %c0_28] : memref<72x256xbf16, #tpu.memory_space<vmem>>, vector<8x256xbf16>
    tpu.vector_store %arg7[%c48, %c0_28], %41 {strides = array<i32>} : memref<72x256xbf16, #tpu.memory_space<vmem>>, vector<8x256xbf16>,
    %c0_29 = arith.constant 0 : index
    %c144 = arith.constant 144 : index
    %43 = vector.load %arg6[%c0_29, %c144] : memref<8x512xf32, #tpu.memory_space<vmem>>, vector<8x256xf32>
    %44 = arith.truncf %43 : vector<8x256xf32> to vector<8x256xbf16>
    %c56 = arith.constant 56 : index
    %c0_30 = arith.constant 0 : index
    %45 = vector.load %arg7[%c56, %c0_30] : memref<72x256xbf16, #tpu.memory_space<vmem>>, vector<8x256xbf16>
    tpu.vector_store %arg7[%c56, %c0_30], %44 {strides = array<i32>} : memref<72x256xbf16, #tpu.memory_space<vmem>>, vector<8x256xbf16>,
    %c0_31 = arith.constant 0 : index
    %c145 = arith.constant 145 : index
    %46 = vector.load %arg6[%c0_31, %c145] : memref<8x512xf32, #tpu.memory_space<vmem>>, vector<8x256xf32>
    %47 = vector.broadcast %3 : vector<1x256xf32> to vector<8x256xf32>
    %48 = arith.mulf %46, %47 : vector<8x256xf32>
    %49 = arith.truncf %48 : vector<8x256xf32> to vector<8x256xbf16>
    %c64 = arith.constant 64 : index
    %c0_32 = arith.constant 0 : index
    %50 = vector.load %arg7[%c64, %c0_32] : memref<72x256xbf16, #tpu.memory_space<vmem>>, vector<8x256xbf16>
    tpu.vector_store %arg7[%c64, %c0_32], %49 {strides = array<i32>} : memref<72x256xbf16, #tpu.memory_space<vmem>>, vector<8x256xbf16>,
    %c0_33 = arith.constant 0 : index
    %c0_34 = arith.constant 0 : index
    %51 = vector.load %arg7[%c0_33, %c0_34] : memref<72x256xbf16, #tpu.memory_space<vmem>>, vector<72x256xbf16>
    %cst_35 = arith.constant dense<0.000000e+00> : vector<8x256xf32>
    %52 = tpu.matmul %0, %51, %cst_35 {dimension_numbers = #tpu.dot_dimension_numbers<[1], [0], [0], [1], [0, 0, 1, 1], [], []>} : vector<8x72xbf16>, vector<72x256xbf16>, vector<8x256xf32> -> vector<8x256xf32>
    %cst_36 = arith.constant 0.000000e+00 : f32
    %53 = vector.broadcast %cst_36 : f32 to vector<8x256xf32>
    %54 = arith.maximumf %52, %53 : vector<8x256xf32>
    %55 = arith.truncf %54 : vector<8x256xf32> to vector<8x256xbf16>
    %cst_37 = arith.constant dense<0.000000e+00> : vector<8x256xf32>
    %56 = tpu.matmul %1, %55, %cst_37 {dimension_numbers = #tpu.dot_dimension_numbers<[1], [0], [0], [1], [0, 0, 1, 1], [], []>} : vector<8x8xbf16>, vector<8x256xbf16>, vector<8x256xf32> -> vector<8x256xf32>
    %57 = arith.addf %9, %56 : vector<8x256xf32>
    %cst_38 = arith.constant 0.000000e+00 : f32
    %58 = vector.broadcast %cst_38 : f32 to vector<8x256xf32>
    %59 = arith.maximumf %57, %58 : vector<8x256xf32>
    %c0_39 = arith.constant 0 : index
    %c128_40 = arith.constant 128 : index
    %60 = vector.load %arg6[%c0_39, %c128_40] : memref<8x512xf32, #tpu.memory_space<vmem>>, vector<8x256xf32>
    tpu.vector_store %arg6[%c0_39, %c128_40], %59 {strides = array<i32>} : memref<8x512xf32, #tpu.memory_space<vmem>>, vector<8x256xf32>,
    %c0_41 = arith.constant 0 : index
    %c111_42 = arith.constant 111 : index
    %61 = vector.load %arg6[%c0_41, %c111_42] : memref<8x512xf32, #tpu.memory_space<vmem>>, vector<8x256xf32>
    %62 = vector.broadcast %2 : vector<1x256xf32> to vector<8x256xf32>
    %63 = arith.mulf %61, %62 : vector<8x256xf32>
    %64 = arith.truncf %63 : vector<8x256xf32> to vector<8x256xbf16>
    %c0_43 = arith.constant 0 : index
    %c0_44 = arith.constant 0 : index
    %65 = vector.load %arg7[%c0_43, %c0_44] : memref<72x256xbf16, #tpu.memory_space<vmem>>, vector<8x256xbf16>
    tpu.vector_store %arg7[%c0_43, %c0_44], %64 {strides = array<i32>} : memref<72x256xbf16, #tpu.memory_space<vmem>>, vector<8x256xbf16>,
    %c0_45 = arith.constant 0 : index
    %c112_46 = arith.constant 112 : index
    %66 = vector.load %arg6[%c0_45, %c112_46] : memref<8x512xf32, #tpu.memory_space<vmem>>, vector<8x256xf32>
    %67 = arith.truncf %66 : vector<8x256xf32> to vector<8x256xbf16>
    %c8_47 = arith.constant 8 : index
    %c0_48 = arith.constant 0 : index
    %68 = vector.load %arg7[%c8_47, %c0_48] : memref<72x256xbf16, #tpu.memory_space<vmem>>, vector<8x256xbf16>
    tpu.vector_store %arg7[%c8_47, %c0_48], %67 {strides = array<i32>} : memref<72x256xbf16, #tpu.memory_space<vmem>>, vector<8x256xbf16>,
    %c0_49 = arith.constant 0 : index
    %c113_50 = arith.constant 113 : index
    %69 = vector.load %arg6[%c0_49, %c113_50] : memref<8x512xf32, #tpu.memory_space<vmem>>, vector<8x256xf32>
    %70 = vector.broadcast %3 : vector<1x256xf32> to vector<8x256xf32>
    %71 = arith.mulf %69, %70 : vector<8x256xf32>
    %72 = arith.truncf %71 : vector<8x256xf32> to vector<8x256xbf16>
    %c16_51 = arith.constant 16 : index
    %c0_52 = arith.constant 0 : index
    %73 = vector.load %arg7[%c16_51, %c0_52] : memref<72x256xbf16, #tpu.memory_space<vmem>>, vector<8x256xbf16>
    tpu.vector_store %arg7[%c16_51, %c0_52], %72 {strides = array<i32>} : memref<72x256xbf16, #tpu.memory_space<vmem>>, vector<8x256xbf16>,
    %c0_53 = arith.constant 0 : index
    %c127_54 = arith.constant 127 : index
    %74 = vector.load %arg6[%c0_53, %c127_54] : memref<8x512xf32, #tpu.memory_space<vmem>>, vector<8x256xf32>
    %75 = vector.broadcast %2 : vector<1x256xf32> to vector<8x256xf32>
    %76 = arith.mulf %74, %75 : vector<8x256xf32>
    %77 = arith.truncf %76 : vector<8x256xf32> to vector<8x256xbf16>
    %c24_55 = arith.constant 24 : index
    %c0_56 = arith.constant 0 : index
    %78 = vector.load %arg7[%c24_55, %c0_56] : memref<72x256xbf16, #tpu.memory_space<vmem>>, vector<8x256xbf16>
    tpu.vector_store %arg7[%c24_55, %c0_56], %77 {strides = array<i32>} : memref<72x256xbf16, #tpu.memory_space<vmem>>, vector<8x256xbf16>,
    %79 = arith.truncf %59 : vector<8x256xf32> to vector<8x256xbf16>
    %c32_57 = arith.constant 32 : index
    %c0_58 = arith.constant 0 : index
    %80 = vector.load %arg7[%c32_57, %c0_58] : memref<72x256xbf16, #tpu.memory_space<vmem>>, vector<8x256xbf16>
    tpu.vector_store %arg7[%c32_57, %c0_58], %79 {strides = array<i32>} : memref<72x256xbf16, #tpu.memory_space<vmem>>, vector<8x256xbf16>,
    %c0_59 = arith.constant 0 : index
    %c129_60 = arith.constant 129 : index
    %81 = vector.load %arg6[%c0_59, %c129_60] : memref<8x512xf32, #tpu.memory_space<vmem>>, vector<8x256xf32>
    %82 = vector.broadcast %3 : vector<1x256xf32> to vector<8x256xf32>
    %83 = arith.mulf %81, %82 : vector<8x256xf32>
    %84 = arith.truncf %83 : vector<8x256xf32> to vector<8x256xbf16>
    %c40_61 = arith.constant 40 : index
    %c0_62 = arith.constant 0 : index
    %85 = vector.load %arg7[%c40_61, %c0_62] : memref<72x256xbf16, #tpu.memory_space<vmem>>, vector<8x256xbf16>
    tpu.vector_store %arg7[%c40_61, %c0_62], %84 {strides = array<i32>} : memref<72x256xbf16, #tpu.memory_space<vmem>>, vector<8x256xbf16>,
    %c0_63 = arith.constant 0 : index
    %c143_64 = arith.constant 143 : index
    %86 = vector.load %arg6[%c0_63, %c143_64] : memref<8x512xf32, #tpu.memory_space<vmem>>, vector<8x256xf32>
    %87 = vector.broadcast %2 : vector<1x256xf32> to vector<8x256xf32>
    %88 = arith.mulf %86, %87 : vector<8x256xf32>
    %89 = arith.truncf %88 : vector<8x256xf32> to vector<8x256xbf16>
    %c48_65 = arith.constant 48 : index
    %c0_66 = arith.constant 0 : index
    %90 = vector.load %arg7[%c48_65, %c0_66] : memref<72x256xbf16, #tpu.memory_space<vmem>>, vector<8x256xbf16>
    tpu.vector_store %arg7[%c48_65, %c0_66], %89 {strides = array<i32>} : memref<72x256xbf16, #tpu.memory_space<vmem>>, vector<8x256xbf16>,
    %c0_67 = arith.constant 0 : index
    %c144_68 = arith.constant 144 : index
    %91 = vector.load %arg6[%c0_67, %c144_68] : memref<8x512xf32, #tpu.memory_space<vmem>>, vector<8x256xf32>
    %92 = arith.truncf %91 : vector<8x256xf32> to vector<8x256xbf16>
    %c56_69 = arith.constant 56 : index
    %c0_70 = arith.constant 0 : index
    %93 = vector.load %arg7[%c56_69, %c0_70] : memref<72x256xbf16, #tpu.memory_space<vmem>>, vector<8x256xbf16>
    tpu.vector_store %arg7[%c56_69, %c0_70], %92 {strides = array<i32>} : memref<72x256xbf16, #tpu.memory_space<vmem>>, vector<8x256xbf16>,
    %c0_71 = arith.constant 0 : index
    %c145_72 = arith.constant 145 : index
    %94 = vector.load %arg6[%c0_71, %c145_72] : memref<8x512xf32, #tpu.memory_space<vmem>>, vector<8x256xf32>
    %95 = vector.broadcast %3 : vector<1x256xf32> to vector<8x256xf32>
    %96 = arith.mulf %94, %95 : vector<8x256xf32>
    %97 = arith.truncf %96 : vector<8x256xf32> to vector<8x256xbf16>
    %c64_73 = arith.constant 64 : index
    %c0_74 = arith.constant 0 : index
    %98 = vector.load %arg7[%c64_73, %c0_74] : memref<72x256xbf16, #tpu.memory_space<vmem>>, vector<8x256xbf16>
    tpu.vector_store %arg7[%c64_73, %c0_74], %97 {strides = array<i32>} : memref<72x256xbf16, #tpu.memory_space<vmem>>, vector<8x256xbf16>,
    %c0_75 = arith.constant 0 : index
    %c0_76 = arith.constant 0 : index
    %99 = vector.load %arg7[%c0_75, %c0_76] : memref<72x256xbf16, #tpu.memory_space<vmem>>, vector<72x256xbf16>
    %cst_77 = arith.constant dense<0.000000e+00> : vector<8x256xf32>
    %100 = tpu.matmul %0, %99, %cst_77 {dimension_numbers = #tpu.dot_dimension_numbers<[1], [0], [0], [1], [0, 0, 1, 1], [], []>} : vector<8x72xbf16>, vector<72x256xbf16>, vector<8x256xf32> -> vector<8x256xf32>
    %cst_78 = arith.constant 0.000000e+00 : f32
    %101 = vector.broadcast %cst_78 : f32 to vector<8x256xf32>
    %102 = arith.maximumf %100, %101 : vector<8x256xf32>
    %103 = arith.truncf %102 : vector<8x256xf32> to vector<8x256xbf16>
    %cst_79 = arith.constant dense<0.000000e+00> : vector<8x256xf32>
    %104 = tpu.matmul %1, %103, %cst_79 {dimension_numbers = #tpu.dot_dimension_numbers<[1], [0], [0], [1], [0, 0, 1, 1], [], []>} : vector<8x8xbf16>, vector<8x256xbf16>, vector<8x256xf32> -> vector<8x256xf32>
    %105 = arith.addf %57, %104 : vector<8x256xf32>
    %cst_80 = arith.constant 0.000000e+00 : f32
    %106 = vector.broadcast %cst_80 : f32 to vector<8x256xf32>
    %107 = arith.maximumf %105, %106 : vector<8x256xf32>
    %c0_81 = arith.constant 0 : index
    %c128_82 = arith.constant 128 : index
    %108 = vector.load %arg6[%c0_81, %c128_82] : memref<8x512xf32, #tpu.memory_space<vmem>>, vector<8x256xf32>
    tpu.vector_store %arg6[%c0_81, %c128_82], %107 {strides = array<i32>} : memref<8x512xf32, #tpu.memory_space<vmem>>, vector<8x256xf32>,
    %c0_83 = arith.constant 0 : index
    %c111_84 = arith.constant 111 : index
    %109 = vector.load %arg6[%c0_83, %c111_84] : memref<8x512xf32, #tpu.memory_space<vmem>>, vector<8x256xf32>
    %110 = vector.broadcast %2 : vector<1x256xf32> to vector<8x256xf32>
    %111 = arith.mulf %109, %110 : vector<8x256xf32>
    %112 = arith.truncf %111 : vector<8x256xf32> to vector<8x256xbf16>
    %c0_85 = arith.constant 0 : index
    %c0_86 = arith.constant 0 : index
    %113 = vector.load %arg7[%c0_85, %c0_86] : memref<72x256xbf16, #tpu.memory_space<vmem>>, vector<8x256xbf16>
    tpu.vector_store %arg7[%c0_85, %c0_86], %112 {strides = array<i32>} : memref<72x256xbf16, #tpu.memory_space<vmem>>, vector<8x256xbf16>,
    %c0_87 = arith.constant 0 : index
    %c112_88 = arith.constant 112 : index
    %114 = vector.load %arg6[%c0_87, %c112_88] : memref<8x512xf32, #tpu.memory_space<vmem>>, vector<8x256xf32>
    %115 = arith.truncf %114 : vector<8x256xf32> to vector<8x256xbf16>
    %c8_89 = arith.constant 8 : index
    %c0_90 = arith.constant 0 : index
    %116 = vector.load %arg7[%c8_89, %c0_90] : memref<72x256xbf16, #tpu.memory_space<vmem>>, vector<8x256xbf16>
    tpu.vector_store %arg7[%c8_89, %c0_90], %115 {strides = array<i32>} : memref<72x256xbf16, #tpu.memory_space<vmem>>, vector<8x256xbf16>,
    %c0_91 = arith.constant 0 : index
    %c113_92 = arith.constant 113 : index
    %117 = vector.load %arg6[%c0_91, %c113_92] : memref<8x512xf32, #tpu.memory_space<vmem>>, vector<8x256xf32>
    %118 = vector.broadcast %3 : vector<1x256xf32> to vector<8x256xf32>
    %119 = arith.mulf %117, %118 : vector<8x256xf32>
    %120 = arith.truncf %119 : vector<8x256xf32> to vector<8x256xbf16>
    %c16_93 = arith.constant 16 : index
    %c0_94 = arith.constant 0 : index
    %121 = vector.load %arg7[%c16_93, %c0_94] : memref<72x256xbf16, #tpu.memory_space<vmem>>, vector<8x256xbf16>
    tpu.vector_store %arg7[%c16_93, %c0_94], %120 {strides = array<i32>} : memref<72x256xbf16, #tpu.memory_space<vmem>>, vector<8x256xbf16>,
    %c0_95 = arith.constant 0 : index
    %c127_96 = arith.constant 127 : index
    %122 = vector.load %arg6[%c0_95, %c127_96] : memref<8x512xf32, #tpu.memory_space<vmem>>, vector<8x256xf32>
    %123 = vector.broadcast %2 : vector<1x256xf32> to vector<8x256xf32>
    %124 = arith.mulf %122, %123 : vector<8x256xf32>
    %125 = arith.truncf %124 : vector<8x256xf32> to vector<8x256xbf16>
    %c24_97 = arith.constant 24 : index
    %c0_98 = arith.constant 0 : index
    %126 = vector.load %arg7[%c24_97, %c0_98] : memref<72x256xbf16, #tpu.memory_space<vmem>>, vector<8x256xbf16>
    tpu.vector_store %arg7[%c24_97, %c0_98], %125 {strides = array<i32>} : memref<72x256xbf16, #tpu.memory_space<vmem>>, vector<8x256xbf16>,
    %127 = arith.truncf %107 : vector<8x256xf32> to vector<8x256xbf16>
    %c32_99 = arith.constant 32 : index
    %c0_100 = arith.constant 0 : index
    %128 = vector.load %arg7[%c32_99, %c0_100] : memref<72x256xbf16, #tpu.memory_space<vmem>>, vector<8x256xbf16>
    tpu.vector_store %arg7[%c32_99, %c0_100], %127 {strides = array<i32>} : memref<72x256xbf16, #tpu.memory_space<vmem>>, vector<8x256xbf16>,
    %c0_101 = arith.constant 0 : index
    %c129_102 = arith.constant 129 : index
    %129 = vector.load %arg6[%c0_101, %c129_102] : memref<8x512xf32, #tpu.memory_space<vmem>>, vector<8x256xf32>
    %130 = vector.broadcast %3 : vector<1x256xf32> to vector<8x256xf32>
    %131 = arith.mulf %129, %130 : vector<8x256xf32>
    %132 = arith.truncf %131 : vector<8x256xf32> to vector<8x256xbf16>
    %c40_103 = arith.constant 40 : index
    %c0_104 = arith.constant 0 : index
    %133 = vector.load %arg7[%c40_103, %c0_104] : memref<72x256xbf16, #tpu.memory_space<vmem>>, vector<8x256xbf16>
    tpu.vector_store %arg7[%c40_103, %c0_104], %132 {strides = array<i32>} : memref<72x256xbf16, #tpu.memory_space<vmem>>, vector<8x256xbf16>,
    %c0_105 = arith.constant 0 : index
    %c143_106 = arith.constant 143 : index
    %134 = vector.load %arg6[%c0_105, %c143_106] : memref<8x512xf32, #tpu.memory_space<vmem>>, vector<8x256xf32>
    %135 = vector.broadcast %2 : vector<1x256xf32> to vector<8x256xf32>
    %136 = arith.mulf %134, %135 : vector<8x256xf32>
    %137 = arith.truncf %136 : vector<8x256xf32> to vector<8x256xbf16>
    %c48_107 = arith.constant 48 : index
    %c0_108 = arith.constant 0 : index
    %138 = vector.load %arg7[%c48_107, %c0_108] : memref<72x256xbf16, #tpu.memory_space<vmem>>, vector<8x256xbf16>
    tpu.vector_store %arg7[%c48_107, %c0_108], %137 {strides = array<i32>} : memref<72x256xbf16, #tpu.memory_space<vmem>>, vector<8x256xbf16>,
    %c0_109 = arith.constant 0 : index
    %c144_110 = arith.constant 144 : index
    %139 = vector.load %arg6[%c0_109, %c144_110] : memref<8x512xf32, #tpu.memory_space<vmem>>, vector<8x256xf32>
    %140 = arith.truncf %139 : vector<8x256xf32> to vector<8x256xbf16>
    %c56_111 = arith.constant 56 : index
    %c0_112 = arith.constant 0 : index
    %141 = vector.load %arg7[%c56_111, %c0_112] : memref<72x256xbf16, #tpu.memory_space<vmem>>, vector<8x256xbf16>
    tpu.vector_store %arg7[%c56_111, %c0_112], %140 {strides = array<i32>} : memref<72x256xbf16, #tpu.memory_space<vmem>>, vector<8x256xbf16>,
    %c0_113 = arith.constant 0 : index
    %c145_114 = arith.constant 145 : index
    %142 = vector.load %arg6[%c0_113, %c145_114] : memref<8x512xf32, #tpu.memory_space<vmem>>, vector<8x256xf32>
    %143 = vector.broadcast %3 : vector<1x256xf32> to vector<8x256xf32>
    %144 = arith.mulf %142, %143 : vector<8x256xf32>
    %145 = arith.truncf %144 : vector<8x256xf32> to vector<8x256xbf16>
    %c64_115 = arith.constant 64 : index
    %c0_116 = arith.constant 0 : index
    %146 = vector.load %arg7[%c64_115, %c0_116] : memref<72x256xbf16, #tpu.memory_space<vmem>>, vector<8x256xbf16>
    tpu.vector_store %arg7[%c64_115, %c0_116], %145 {strides = array<i32>} : memref<72x256xbf16, #tpu.memory_space<vmem>>, vector<8x256xbf16>,
    %c0_117 = arith.constant 0 : index
    %c0_118 = arith.constant 0 : index
    %147 = vector.load %arg7[%c0_117, %c0_118] : memref<72x256xbf16, #tpu.memory_space<vmem>>, vector<72x256xbf16>
    %cst_119 = arith.constant dense<0.000000e+00> : vector<8x256xf32>
    %148 = tpu.matmul %0, %147, %cst_119 {dimension_numbers = #tpu.dot_dimension_numbers<[1], [0], [0], [1], [0, 0, 1, 1], [], []>} : vector<8x72xbf16>, vector<72x256xbf16>, vector<8x256xf32> -> vector<8x256xf32>
    %cst_120 = arith.constant 0.000000e+00 : f32
    %149 = vector.broadcast %cst_120 : f32 to vector<8x256xf32>
    %150 = arith.maximumf %148, %149 : vector<8x256xf32>
    %151 = arith.truncf %150 : vector<8x256xf32> to vector<8x256xbf16>
    %cst_121 = arith.constant dense<0.000000e+00> : vector<8x256xf32>
    %152 = tpu.matmul %1, %151, %cst_121 {dimension_numbers = #tpu.dot_dimension_numbers<[1], [0], [0], [1], [0, 0, 1, 1], [], []>} : vector<8x8xbf16>, vector<8x256xbf16>, vector<8x256xf32> -> vector<8x256xf32>
    %153 = arith.addf %105, %152 : vector<8x256xf32>
    %cst_122 = arith.constant 0.000000e+00 : f32
    %154 = vector.broadcast %cst_122 : f32 to vector<8x256xf32>
    %155 = arith.maximumf %153, %154 : vector<8x256xf32>
    %c0_123 = arith.constant 0 : index
    %c0_124 = arith.constant 0 : index
    %c0_125 = arith.constant 0 : index
    %156 = vector.load %arg5[%c0_123, %c0_124, %c0_125] : memref<1x8x256xf32, #tpu.memory_space<vmem>>, vector<1x8x256xf32>
    %157 = vector.shape_cast %156 : vector<1x8x256xf32> to vector<8x256xf32>
    %158 = vector.shape_cast %155 : vector<8x256xf32> to vector<1x8x256xf32>
    tpu.vector_store %arg5[%c0_123, %c0_124, %c0_125], %158 {strides = array<i32>} : memref<1x8x256xf32, #tpu.memory_space<vmem>>, vector<1x8x256xf32>,
    return
  }
  func.func @transform_0(%arg0: i32) -> (i32, i32, i32) {
    %c0_i32 = arith.constant 0 : i32
    %c0_i32_0 = arith.constant 0 : i32
    %c0_i32_1 = arith.constant 0 : i32
    return %arg0, %c0_i32, %c0_i32_0 : i32, i32, i32
  }
  func.func @transform_1(%arg0: i32) -> (i32, i32) {
    %c0_i32 = arith.constant 0 : i32
    %c0_i32_0 = arith.constant 0 : i32
    %c0_i32_1 = arith.constant 0 : i32
    return %c0_i32, %c0_i32_0 : i32, i32
  }
  func.func @transform_2(%arg0: i32) -> (i32, i32) {
    %c0_i32 = arith.constant 0 : i32
    %c0_i32_0 = arith.constant 0 : i32
    %c0_i32_1 = arith.constant 0 : i32
    return %c0_i32, %c0_i32_0 : i32, i32
  }
  func.func @transform_3(%arg0: i32) -> (i32, i32) {
    %c0_i32 = arith.constant 0 : i32
    %c0_i32_0 = arith.constant 0 : i32
    %c0_i32_1 = arith.constant 0 : i32
    return %c0_i32, %c0_i32_0 : i32, i32
  }
  func.func @transform_4(%arg0: i32) -> (i32, i32, i32) {
    %c0_i32 = arith.constant 0 : i32
    %c0_i32_0 = arith.constant 0 : i32
    %c0_i32_1 = arith.constant 0 : i32
    return %arg0, %c0_i32, %c0_i32_0 : i32, i32, i32
  }
}

</mosaic_0001>

<bundles_post_ra>
// kernel: tpu_custom_call.1
= control target key start
LH: loop header
LB: loop body
LE: loop exit
PB: predicated region body
PF: predicated region fallthrough
CT: control target
= control target key end

     0   :  { %9 = vsyncpa [#allocation5], 0  ;;  %s2252_s0 = inlined_call_operand.hbm [shape: f32[2,8,256], index: 0, kind: input, shape index: {}]   ;;  %s2253_s1 = inlined_call_operand.hbm [shape: bf16[8,72], index: 1, kind: input, shape index: {}]   ;;  %s2254_s2 = inlined_call_operand.hbm [shape: bf16[8,8], index: 2, kind: input, shape index: {}]   ;;  %s2255_s3 = inlined_call_operand.hbm [shape: f32[2,256], index: 3, kind: input, shape index: {}]   ;;  %s2256_s4 = inlined_call_operand.hbm [shape: f32[2,8,256], index: 4, kind: output, shape index: {}]  }
   0x1   :  { %11 = vsyncpa [#allocation5 + $0x1], 0 }
   0x2   :  { %12 = vsyncpa [#allocation8], 0 }
   0x3   :  { %13 = vsyncpa [#allocation11], 0 }
   0x4   :  { %14 = vsyncpa [#allocation6], 0 }
   0x5   :  { %16 = vsyncpa [#allocation6 + $0x1], 0  ;;  %s1795_s15 = smov 0   ;;  %s1797_s16 = smov 0  }
   0x6   :  { %s1799_s17 = smov 0   ;;  %s1801_s18 = smov 0  }
   0x7 LB: > { %s1816_s19 = sadd.s32 4294967295, %s1755_s18   ;;  %s1320_s20 = sadd.s32 4294967294, %s1755_s18   ;;  %s1755_s18 = sphi %s1801_s18, %s2266_s18   ;;  %s1751_s17 = sphi %s1799_s17, %s2265_s17   ;;  %s1747_s16 = sphi %s1797_s16, %s2264_s16   ;;  %s1743_s15 = sphi %s1795_s15, %s2263_s15  }
   0x8   : > { %p42_p0 = scmp.ne.s32.totalorder %s1747_s16, %s1743_s15  ;;  %p43_p1 = scmp.eq.s32.totalorder %s1816_s19, 0 }
   0x9   : > { %p129_p2 = scmp.eq.s32.totalorder %s1816_s19, 1  ;;  %p135_p3 = scmp.eq.s32.totalorder %s1320_s20, 1 }
   0xa   : > { %p1825_p4 = por %p43_p1, %p42_p0  ;;  %p1321_p5 = scmp.ge.s32.totalorder %s1755_s18, 1 }
   0xb   : > { %p1830_p6 = por %p135_p3, %p42_p0  ;;  %p142_p7 = scmp.lt.s32.totalorder %s1755_s18, 3 }
   0xc   : > { %s154_s25 = sshll.u32 %s2253_s1, 4  ;;  %s1757_s27 = smov [#allocation7]   ;;  %s155_s25 = int_to_ptr.hbm [resolvable:$true] %s154_s25 }
   0xd   : > { %p1838_p8 = pnand %p1321_p5, %p142_p7  ;;  %s156_s28 = sshll.u32 %s1757_s27, 4  ;;  %s157_s28 = int_to_ptr.vmem [resolvable:$true] %s156_s28 }
   0xe   : > { %s166_s5 = sshll.u32 %s2254_s2, 4  ;;  %s178_s8 = sshll.u32 %s2255_s3, 4  ;;  %s167_s5 = int_to_ptr.hbm [resolvable:$true] %s166_s5  ;;  %s179_s8 = int_to_ptr.hbm [resolvable:$true] %s178_s8 }
   0xf   : > { %p1490_p10 = pneg %p1838_p8  ;;  %s1758_s9 = smov [#allocation9]  }
  0x10   : > { %s168_s10 = sshll.u32 %s1758_s9, 4  ;;  %s1759_s11 = smov [#allocation10]   ;;  %s169_s10 = int_to_ptr.vmem [resolvable:$true] %s168_s10 }
  0x11   : > { %p1491_p11 = pnand %p1490_p10, %p43_p1  ;;  %s180_s12 = sshll.u32 %s1759_s11, 4  ;;  %s181_s12 = int_to_ptr.vmem [resolvable:$true] %s180_s12 }
  0x12   : > { %s1854_s13 = sadd.s32 1, %s1755_s18   ;;  %s29_s20 = sadd.s32 1, %s1751_s17 }
  0x13   : > { %1493 = dma.hbm_to_vmem [thread:$0]  (!%p1491_p11), %s155_s25, 64, %s157_s28, [#allocation8]  }
  0x14   : > { %1496 = dma.hbm_to_vmem [thread:$0]  (!%p1491_p11), %s167_s5, 64, %s169_s10, [#allocation8]  }
  0x15   : > { %1499 = dma.hbm_to_vmem [thread:$0]  (!%p1491_p11), %s179_s8, 64, %s181_s12, [#allocation11]  }
  0x16   : > { %s26_s14 = ssub.s32 %s1755_s18, %s1854_s13  ;;  %p36_p13 = scmp.ne.s32.totalorder %s1751_s17, %s1747_s16 }
  0x17   : > { %p27_p12 = scmp.eq.s32.totalorder %s26_s14, 0  ;;  %p37_p0 = scmp.eq.s32.totalorder %s1755_s18, 0 }
  0x18   : > { %p1867_p3 = por %p129_p2, %p36_p13  ;;  %p1511_p5 = scmp.lt.s32.totalorder %s1755_s18, 2 }
  0x19   : > { %s1863_s23 = scalar_select %p27_p12, %s1751_s17, %s29_s20  }
  0x1a   : > { %s191_s25 = sand.u32 1, %s1751_s17   ;;  %s1448_s27 = sshll.u32 %s1755_s18, 4 }
  0x1b   : > { %p38_p7 = por %p37_p0, %p36_p13  ;;  %s1326_s28 = sshll.u32 %s191_s25, 4 }
  0x1c   : > { %s200_s5 = scalar_lea.hbm %s2252_s0, %s1448_s27  ;;  %s195_s7 = scalar_lea.vmem [#allocation4], %s1326_s28 }
  0x1d   : > { %s202_s6 = sshll.u32 %s200_s5, 4  ;;  %s204_s8 = sshll.u32 %s195_s7, 4  ;;  %s203_s6 = int_to_ptr.hbm [resolvable:$true] %s202_s6  ;;  %s205_s8 = int_to_ptr.vmem [resolvable:$true] %s204_s8 }
  0x1e   : > { %p1877_p10 = pnand %p1511_p5, %p38_p7  ;;  %s192_s10 = scalar_lea.sflag [#allocation5], %s191_s25 }
  0x1f   : > { %s1651_s11 = sshra.s32 %s203_s6, 4  ;;  %s1658_s27 = scalar_lea.hbm %s2252_s0, 32  ;;  %s1652_s11 = int_to_ptr.hbm [resolvable:$true] %s1651_s11 }
  0x20   : > { %s1653_s12 = scalar_lea.hbm %s1652_s11, 16  ;;  %p1655_p11 = pneg %p1877_p10 }
  0x21   : > { %p1654_p2 = scmp.ne.s32.totalorder %s1652_s11, %s1653_s12  ;;  %p1659_p0 = scmp.lt.s32.totalorder %s1652_s11, %s2252_s0 }
  0x22   : > { %p1660_p5 = scmp.lt.s32.totalorder %s1658_s27, %s1653_s12 }
  0x23   : > { %p1656_p12 = pnand %p1655_p11, %p1654_p2 }
  0x24   : > { %p1661_p7 = por %p1660_p5, %p1659_p0 }
  0x25   : > { %p1657_p13 = pneg %p1656_p12 }
  0x27   : > { %p1662_p9 = pnand %p1661_p7, %p1657_p13 }
  0x29   : > { %1665 = shalt.err (!%p1662_p9)
}
  0x2a   : > { %1503 = dma.hbm_to_vmem [thread:$0]  (!%p1877_p10), %s203_s6, 256, %s205_s8, %s192_s10  }
  0x2b   : > { %213 = sbr.rel (%p1838_p8) target bundleno = 1499 (0x5db), region = 36  ;;  %s1894_s25 = sand.u32 (!%p1838_p8), 1, %s1747_s16  }
  0x2c   : > { %s1330_s30 = sshll.u32 (!%p1838_p8), %s1894_s25, 4  ;;  %s216_s5 = scalar_lea.sflag (!%p1838_p8), [#allocation5], %s1894_s25 }
  0x2d   : > { %s1900_s7 = scalar_lea.vmem (!%p1838_p8), [#allocation4], %s1330_s30 }
  0x30   : > { %1726 = dma.done.wait (%p1825_p4), %s216_s5, 256  }
  0x31   : > { %1728 = vsyncadd (%p1825_p4), %s216_s5, 4294967040 }
  0x32   : > { %1730 = dma.done.wait (%p43_p1), [#allocation8], 128  }
  0x33   : > { %1732 = vsyncadd (%p43_p1), [#allocation8], 4294967168 }
  0x34   : > { %1734 = dma.done.wait (%p43_p1), [#allocation11], 64  }
  0x35   : > { %1736 = vsyncadd (%p43_p1), [#allocation11], 4294967232  ;;  %v265_v0 = vld [vmem:[#allocation10 + $0x1] ss:$2 sm:$0x3]  ;;  %s1760_s26 = smov 17  }
  0x36   : > { %v263_v1 = vld [vmem:[#allocation10] ss:$2 sm:$0x3]  ;;  %v330_v2 = vperm.slane %v265_v0, 0  ;;  %s1761_s21 = smov 15   ;;  %s1762_s6 = smov 1  }
  0x37   : > { %v278_v3 = vperm.slane %v263_v1, 0  ;;  %v331_v4 = vperm.slane %v265_v0, 1  ;;  %v279_v5 = vperm.slane %v263_v1, 1  ;;  %s1763_s8 = smov 113   ;;  %s1764_s9 = smov 127   ;;  %v1927_v6 = vld [vmem:[%s1900_s7] sm:$0xff] }
  0x38   : > { %472 = vrot.lane.b32.xlu0 %v330_v2, %s1760_s26  ;;  %394 = vrot.lane.b32.xlu2 %v330_v2, %s1762_s6  ;;  %s1765_s10 = smov 111   ;;  %v1930_v7 = vld [vmem:[%s1900_s7 + $0x8] sm:$0xff]  ;;  %v1933_v8 = vmax.f32 %v1927_v6, 0.0  ;;  %s1766_s11 = smov 112   ;;  %v1767_v11 = vmov 0.0|0.0   ;;  %vm304_vm0 = vcmask 138240  }
  0x39   : > { %424 = vrot.lane.b32.xlu1 %v278_v3, %s1761_s21  ;;  %v1936_v9 = vmax.f32 %v1930_v7, 0.0  ;;  %vm366_vm1 = vcmask 1039360   ;;  %vm355_vm2 = vcmask 121856   ;;  %vm385_vm3 = vcmask 7168   ;;  %s1769_s12 = smov 16   ;;  %s1473_s14 = sshll.u32 %s1816_s19, 4 }
  0x3a   : > { %vm284_vm4 = vcmask 908288   ;;  %vm336_vm5 = vcmask 924672   ;;  %v1768_v60 = vmov 0.0   ;;  %vm302_vm6 = vcmask 1043456   ;;  %s1216_s28 = scalar_lea.hbm %s2256_s4, %s1473_s14  ;;  %s259_s29 = scalar_lea.vmem [#allocation12], %s1330_s30 }
  0x3b   : > { %v389_v10 = vpack.c.bf16 %v1936_v9, %v1933_v8  ;;  %v311_v61 = vpack.c.bf16 %v1933_v8, %v1768_v60  ;;  %v312_v62 = vpack.c.bf16 %v1936_v9, %v1936_v9  ;;  %vm465_vm7 = vcmask 916480   ;;  %s1218_s5 = sshll.u32 %s259_s29, 4  ;;  %s1220_s7 = sshll.u32 %s1216_s28, 4  ;;  %s1219_s5 = int_to_ptr.vmem [resolvable:$true] %s1218_s5  ;;  %s1221_s7 = int_to_ptr.hbm [resolvable:$true] %s1220_s7 }
  0x3c   : > { %vm322_vm8 = vcmask 130048   ;;  %vm553_vm9 = vcmask 588800   ;;  %vm594_vm10 = vcmask 64512   ;;  %s1205_s19 = scalar_lea.sflag [#allocation6], %s1894_s25  ;;  %s1701_s30 = scalar_lea.hbm %s2256_s4, 32 }
  0x3d   : > { %390 = vst [vmem:[#allocation3 + $0x20] sm:$0xff] %v389_v10 }
  0x40   : > { %474 = vrot.lane.b32.xlu0 %v331_v4, %s1760_s26  ;;  %396 = vrot.lane.b32.xlu2 %v331_v4, %s1762_s6 }
  0x41   : > { %426 = vrot.lane.b32.xlu1 %v279_v5, %s1761_s21 }
  0x48   : > { %332 = vrot.lane.b32.xlu0 %v330_v2, %s1763_s8  ;;  %362 = vrot.lane.b32.xlu2 %v278_v3, %s1764_s9 }
  0x49   : > { %334 = vrot.lane.b32.xlu1 %v331_v4, %s1763_s8 }
  0x50   : > { %364 = vrot.lane.b32.xlu0 %v279_v5, %s1764_s9  ;;  %282 = vrot.lane.b32.xlu2 %v279_v5, %s1765_s10 }
  0x51   : > { %280 = vrot.lane.b32.xlu1 %v278_v3, %s1765_s10 }
  0x58   : > { %460 = vrot.lane.b32.xlu2 %v1767_v11, %s1766_s11 }
  0x59   : > { %458 = vrot.lane.b32.xlu1 %v389_v10, %s1766_s11 }
  0x92   : > { %v1943_v12 = vpop.permute.xlu2 %394 }
  0x93   : > { %v403_v44 = vmul.f32 %v1943_v12, %v1933_v8 }
  0x9a   : > { %v397_v19 = vpop.permute.xlu2 %396 }
  0x9b   : > { %v405_v22 = vmul.f32 0.0, %v397_v19  ;;  %v1994_v41 = vsel %vm385_vm3, %v1943_v12, %v397_v19 }
  0x9c   : > { %v404_v46 = vmul.f32 %v1994_v41, %v1936_v9 }
  0x9d   : > { %v1959_v25 = vpack.c.bf16 %v405_v22, %v405_v22 }
  0x9e   : > { %v406_v52 = vpack.c.bf16 %v404_v46, %v403_v44 }
  0xa2   : > { %v363_v27 = vpop.permute.xlu2 %362 }
  0xa3   : > { %v1976_v33 = vmul.f32 0.0, %v363_v27 }
  0xaa   : > { %v1945_v13 = vpop.permute.xlu0 %472  ;;  %v1986_v39 = vpop.permute.xlu2 %282 }
  0xab   : > { %v1947_v14 = vpop.permute.xlu1 %424  ;;  %v481_v30 = vmul.f32 %v1945_v13, %v1933_v8  ;;  %v291_v43 = vmul.f32 %v1986_v39, %v1936_v9 }
  0xac   : > { %v433_v48 = vmul.f32 %v1947_v14, %v1933_v8 }
  0xad   : > { %v293_v49 = vpack.c.bf16 %v291_v43, %v291_v43 }
  0xb2   : > { %v475_v15 = vpop.permute.xlu0 %474  ;;  %v461_v63 = vpop.permute.xlu2 %460 }
  0xb3   : > { %v427_v16 = vpop.permute.xlu1 %426  ;;  %v483_v17 = vmul.f32 0.0, %v475_v15  ;;  %v1965_v29 = vsel %vm304_vm0, %v1945_v13, %v475_v15  ;;  %v463_v0 = vrot.slane %v461_v63, 4 }
  0xb4   : > { %v435_v18 = vmul.f32 0.0, %v427_v16  ;;  %v482_v31 = vmul.f32 %v1965_v29, %v1936_v9  ;;  %v1990_v40 = vsel %vm355_vm2, %v1947_v14, %v427_v16 }
  0xb5   : > { %v1949_v20 = vpack.c.bf16 %v483_v17, %v483_v17  ;;  %v434_v45 = vmul.f32 %v1990_v40, %v1936_v9 }
  0xb6   : > { %v1951_v21 = vpack.c.bf16 %v435_v18, %v435_v18  ;;  %v484_v38 = vpack.c.bf16 %v482_v31, %v481_v30 }
  0xb7   : > { %490 = vrot.lane.b32.xlu1 %v1949_v20, %s1765_s10  ;;  %v436_v51 = vpack.c.bf16 %v434_v45, %v433_v48 }
  0xb8   : > { %442 = vrot.lane.b32.xlu0 %v1951_v21, %s1763_s8 }
  0xba   : > { %v333_v23 = vpop.permute.xlu0 %332 }
  0xbb   : > { %v1957_v24 = vpop.permute.xlu1 %334  ;;  %v2025_v56 = vmul.f32 0.0, %v333_v23 }
  0xbc   : > { %v343_v26 = vmul.f32 %v1957_v24, %v1936_v9  ;;  %v2016_v53 = vsel %vm336_vm5, %v333_v23, %v1957_v24 }
  0xbd   : > { %v342_v57 = vmul.f32 %v2016_v53, %v1933_v8 }
  0xbe   : > { %v345_v28 = vpack.c.bf16 %v343_v26, %v343_v26 }
  0xbf   : > { %412 = vrot.lane.b32.xlu1 %v1959_v25, %s1764_s9  ;;  %v344_v59 = vpack.c.bf16 %v342_v57, %v2025_v56 }
  0xc0   : > { %350 = vrot.lane.b32.xlu0 %v345_v28, %s1761_s21 }
  0xc2   : > { %v1974_v32 = vpop.permute.xlu0 %364 }
  0xc3   : > { %v1980_v34 = vsel %vm366_vm1, %v363_v27, %v1974_v32  ;;  %v373_v35 = vmul.f32 %v1974_v32, %v1936_v9  ;;  %v281_v47 = vpop.permute.xlu1 %280 }
  0xc4   : > { %v372_v36 = vmul.f32 %v1980_v34, %v1933_v8  ;;  %v2012_v50 = vsel %vm284_vm4, %v281_v47, %v1986_v39  ;;  %v2020_v54 = vmul.f32 0.0, %v281_v47 }
  0xc5   : > { %v375_v37 = vpack.c.bf16 %v373_v35, %v373_v35  ;;  %v290_v55 = vmul.f32 %v2012_v50, %v1933_v8 }
  0xc6   : > { %v374_v42 = vpack.c.bf16 %v372_v36, %v1976_v33 }
  0xc7   : > { %380 = vrot.lane.b32.xlu2 %v375_v37, %s1762_s6  ;;  %v292_v58 = vpack.c.bf16 %v290_v55, %v2020_v54 }
  0xc8   : > { %488 = vrot.lane.b32.xlu0 %v484_v38, %s1765_s10  ;;  %378 = vrot.lane.b32.xlu1 %v374_v42, %s1762_s6 }
  0xcb   : > { %v459_v1 = vpop.permute.xlu1 %458 }
  0xcc   : > { %v462_v2 = vrot.slane %v459_v1, 4 }
  0xce   : > { %v464_v3 = vsel %vm302_vm6, %v462_v2, %v463_v0 }
  0xcf   : > { %440 = vrot.lane.b32.xlu2 %v436_v51, %s1763_s8  ;;  %v466_v4 = vsel %vm465_vm7, %v459_v1, %v464_v3 }
  0xd0   : > { %410 = vrot.lane.b32.xlu0 %v406_v52, %s1764_s9  ;;  %298 = vrot.lane.b32.xlu1 %v293_v49, %s1760_s26  ;;  %468 = vst [vmem:[#allocation3 + $0x38] sm:$0xff] %v466_v4 }
  0xd7   : > { %348 = vrot.lane.b32.xlu2 %v344_v59, %s1761_s21  ;;  %v1456_v57 = vld [vmem:[#allocation3 + $0x34] sm:$0xf0] }
  0xd8   : > { %296 = vrot.lane.b32.xlu0 %v292_v58, %s1760_s26  ;;  %747 = vrot.lane.b32.xlu1 %v1951_v21, %s1763_s8  ;;  %v1363_v58 = vld [vmem:[#allocation3 + $0x38] sm:$0xf0] }
  0xdf   : > { %315 = vrot.lane.b32.xlu2 %v311_v61, %s1769_s12 }
  0xe0   : > { %317 = vrot.lane.b32.xlu0 %v312_v62, %s1769_s12 }
  0xe7   : > { %784 = vrot.lane.b32.xlu2 %v1949_v20, %s1765_s10 }
  0xe8   : > { %764 = vrot.lane.b32.xlu0 %v1767_v11, %s1766_s11 }
  0xef   : > { %727 = vrot.lane.b32.xlu2 %v1959_v25, %s1764_s9 }
 0x121   : > { %v381_v5 = vpop.permute.xlu2 %380 }
 0x122   : > { %v383_v38 = vrot.slane %v381_v5, 4 }
 0x129   : > { %v441_v9 = vpop.permute.xlu2 %440  ;;  %v491_v16 = vpop.permute.xlu1 %490 }
 0x12a   : > { %v443_v8 = vpop.permute.xlu0 %442  ;;  %v444_v15 = vrot.slane %v441_v9, 4  ;;  %v493_v31 = vrot.slane %v491_v16, 4  ;;  %v1453_v16 = vld [vmem:[#allocation3 + $0x24] sm:$0xf] }
 0x12b   : > { %v445_v10 = vrot.slane %v443_v8, 4 }
 0x12d   : > { %v446_v17 = vsel %vm302_vm6, %v444_v15, %v445_v10  ;;  %v1353_v15 = vld [vmem:[#allocation3 + $0x20] sm:$0xf] }
 0x12e   : > { %v448_v18 = vsel %vm336_vm5, %v441_v9, %v446_v17 }
 0x12f   : > { %450 = vst [vmem:[#allocation3 + $0x30] sm:$0xff] %v448_v18 }
 0x131   : > { %v349_v22 = vpop.permute.xlu2 %348  ;;  %v413_v27 = vpop.permute.xlu1 %412 }
 0x132   : > { %v351_v19 = vpop.permute.xlu0 %350  ;;  %v352_v26 = vrot.slane %v349_v22, 4  ;;  %v415_v59 = vrot.slane %v413_v27, 4 }
 0x133   : > { %v353_v23 = vrot.slane %v351_v19, 4 }
 0x135   : > { %v354_v28 = vsel %vm302_vm6, %v352_v26, %v353_v23 }
 0x136   : > { %v356_v30 = vsel %vm355_vm2, %v349_v22, %v354_v28  ;;  %v1361_v55 = vld [vmem:[#allocation3 + $0x30] sm:$0xf]  ;;  %v1455_v0 = vld [vmem:[#allocation3 + $0x34] sm:$0xf] }
 0x137   : > { %358 = vst [vmem:[#allocation3 + $0x10] sm:$0xff] %v356_v30  ;;  %v1362_v3 = vor.u32 %v1456_v57, %v1361_v55  ;;  %v1366_v4 = vor.u32 %v1455_v0, %v1363_v58  ;;  %v2065_v55 = vld [vmem:[#allocation7] sm:$0xf] }
 0x139   : > { %v316_v27 = vpop.permute.xlu2 %315 }
 0x13a   : > { %v489_v35 = vpop.permute.xlu0 %488  ;;  %v379_v37 = vpop.permute.xlu1 %378 }
 0x13b   : > { %v492_v36 = vrot.slane %v489_v35, 4  ;;  %v382_v42 = vrot.slane %v379_v37, 4 }
 0x13d   : > { %v494_v43 = vsel %vm302_vm6, %v492_v36, %v493_v31  ;;  %v384_v45 = vsel %vm302_vm6, %v382_v42, %v383_v38  ;;  %v319_v31 = vrot.slane %v316_v27, 4 }
 0x13e   : > { %v496_v44 = vsel %vm284_vm4, %v489_v35, %v494_v43  ;;  %v386_v46 = vsel %vm385_vm3, %v379_v37, %v384_v45  ;;  %v1345_v36 = vld [vmem:[#allocation3 + $0x10] sm:$0xf]  ;;  %v1451_v37 = vld [vmem:[#allocation3 + $0x14] sm:$0xf] }
 0x13f   : > { %v533_v47 = vunpack.c.l.b16 %v496_v44  ;;  %v534_v48 = vunpack.c.h.b16 %v496_v44  ;;  %388 = vst [vmem:[#allocation3 + $0x18] sm:$0xff] %v386_v46 }
 0x141   : > { %v543_v49 = vpack.c.b16 %v533_v47, %v533_v47  ;;  %v544_v51 = vpack.c.b16 %v534_v48, %v534_v48 }
 0x142   : > { %v411_v52 = vpop.permute.xlu0 %410  ;;  %v299_v5 = vpop.permute.xlu1 %298 }
 0x143   : > { %v414_v61 = vrot.slane %v411_v52, 4  ;;  %v559_v62 = vsel %vm302_vm6, %v543_v49, 0  ;;  %v562_v63 = vsel %vm302_vm6, %v544_v51, 0  ;;  %v301_v8 = vrot.slane %v299_v5, 4 }
 0x144   : > { %567 = vmatpush.bf16.msra.mxu0 %v559_v62  ;;  %580 = vmatpush.bf16.msra.mxu1 %v562_v63 }
 0x145   : > { %v416_v1 = vsel %vm302_vm6, %v414_v61, %v415_v59 }
 0x146   : > { %v418_v2 = vsel %vm366_vm1, %v411_v52, %v416_v1  ;;  %v1452_v28 = vld [vmem:[#allocation3 + $0x14] sm:$0xf0]  ;;  %v1347_v30 = vld [vmem:[#allocation3 + $0x18] sm:$0xf0] }
 0x147   : > { %420 = vst [vmem:[#allocation3 + $0x28] sm:$0xff] %v418_v2  ;;  %v1346_v42 = vor.u32 %v1452_v28, %v1345_v36  ;;  %v1350_v43 = vor.u32 %v1451_v37, %v1347_v30  ;;  %v2073_v2 = vld [vmem:[#allocation9] sm:$0xf] }
 0x148   : > { %568 = vmatpush.bf16.msra.mxu0 %v1362_v3  ;;  %581 = vmatpush.bf16.msra.mxu1 %v1366_v4 }
 0x14a   : > { %v297_v9 = vpop.permute.xlu0 %296 }
 0x14b   : > { %v300_v10 = vrot.slane %v297_v9, 4 }
 0x14d   : > { %v303_v17 = vsel %vm302_vm6, %v300_v10, %v301_v8 }
 0x14e   : > { %v305_v18 = vsel %vm304_vm0, %v297_v9, %v303_v17  ;;  %v1454_v19 = vld [vmem:[#allocation3 + $0x24] sm:$0xf0]  ;;  %v1355_v22 = vld [vmem:[#allocation3 + $0x28] sm:$0xf0] }
 0x14f   : > { %307 = vst [vmem:[#allocation3] sm:$0xff] %v305_v18  ;;  %v1354_v23 = vor.u32 %v1454_v19, %v1353_v15  ;;  %v1358_v26 = vor.u32 %v1453_v16, %v1355_v22 }
 0x151   : > { %569 = vmatpush.bf16.msra.mxu0 %v1354_v23  ;;  %582 = vmatpush.bf16.msra.mxu1 %v1358_v26 }
 0x152   : > { %v318_v35 = vpop.permute.xlu0 %317 }
 0x153   : > { %v320_v38 = vrot.slane %v318_v35, 4 }
 0x155   : > { %v321_v44 = vsel %vm302_vm6, %v319_v31, %v320_v38  ;;  %570 = vmatpush.bf16.msra.mxu0 %v1346_v42  ;;  %583 = vmatpush.bf16.msra.mxu1 %v1350_v43 }
 0x156   : > { %v323_v45 = vsel %vm322_vm8, %v316_v27, %v321_v44  ;;  %v1337_v46 = vld [vmem:[#allocation3] sm:$0xf]  ;;  %v1449_v48 = vld [vmem:[#allocation3 + $0x4] sm:$0xf] }
 0x157   : > { %325 = vst [vmem:[#allocation3 + $0x8] sm:$0xff] %v323_v45 }
 0x15e   : > { %v1450_v47 = vld [vmem:[#allocation3 + $0x4] sm:$0xf0]  ;;  %v1339_v49 = vld [vmem:[#allocation3 + $0x8] sm:$0xf0] }
 0x15f   : > { %v1338_v51 = vor.u32 %v1450_v47, %v1337_v46  ;;  %v1342_v52 = vor.u32 %v1449_v48, %v1339_v49 }
 0x161   : > { %571 = vmatpush.bf16.msra.mxu0 %v1338_v51  ;;  %584 = vmatpush.bf16.msra.mxu1 %v1342_v52 }
 0x164   : > { %1367 = vmatmul.msk.bf16.vlgmr.msra.gmra.mxu0 %vm553_vm9, %v2065_v55  ;;  %1368 = vmatmul.msk.bf16.vlgmr.msra.gmra.mxu1 %vm553_vm9, %v2065_v55 }
 0x1e1   : > { %v573_v57 = vpop.f32.mrf.mxu0  ;;  %v586_v58 = vpop.f32.mrf.mxu1 }
 0x1e2   : > { %v590_v59 = vmax.f32 %v573_v57, 0.0  ;;  %v591_v61 = vmax.f32 %v586_v58, 0.0  ;;  %v765_v58 = vpop.permute.xlu0 %764 }
 0x1e4   : > { %v592_v62 = vpack.c.bf16 %v590_v59, %v590_v59  ;;  %v593_v63 = vpack.c.bf16 %v591_v61, %v591_v61  ;;  %v767_v59 = vrot.slane %v765_v58, 4 }
 0x1e6   : > { %v599_v0 = vsel %vm302_vm6, %v592_v62, 0  ;;  %v602_v1 = vsel %vm302_vm6, %v593_v63, 0 }
 0x1e7   : > { %611 = vmatpush.bf16.msra.mxu2 %v599_v0  ;;  %624 = vmatpush.bf16.msra.mxu3 %v602_v1  ;;  %v748_v1 = vpop.permute.xlu1 %747 }
 0x1e9   : > { %v575_v3 = vpop.f32.mrf.mxu0  ;;  %v588_v4 = vpop.f32.mrf.mxu1 }
 0x1ea   : > { %1369 = vmatmul.msk.bf16.vlgmr.msra.gmra.mxu2 %vm594_vm10, %v2073_v2  ;;  %1370 = vmatmul.msk.bf16.vlgmr.msra.gmra.mxu3 %vm594_vm10, %v2073_v2 }
 0x26d   : > { %v613_v5 = vpop.f32.mrf.mxu2  ;;  %v626_v8 = vpop.f32.mrf.mxu3 }
 0x26e   : > { %v2080_v9 = vadd.f32 %v613_v5, %v1927_v6  ;;  %v2083_v10 = vadd.f32 %v626_v8, %v1930_v7 }
 0x270   : > { %v632_v15 = vmax.f32 %v2080_v9, 0.0  ;;  %v633_v16 = vmax.f32 %v2083_v10, 0.0 }
 0x272   : > { %v713_v17 = vpack.c.bf16 %v633_v16, %v632_v15  ;;  %v775_v18 = vmul.f32 %v632_v15, %v1945_v13  ;;  %v776_v19 = vmul.f32 %v633_v16, %v1965_v29  ;;  %v738_v22 = vmul.f32 %v632_v15, %v1947_v14 }
 0x273   : > { %v739_v23 = vmul.f32 %v633_v16, %v1990_v40  ;;  %v697_v28 = vmul.f32 %v632_v15, %v1980_v34  ;;  %v718_v30 = vmul.f32 %v632_v15, %v1943_v12  ;;  %v719_v31 = vmul.f32 %v633_v16, %v1994_v41 }
 0x274   : > { %762 = vrot.lane.b32.xlu2 %v713_v17, %s1766_s11  ;;  %714 = vst [vmem:[#allocation3 + $0x20] sm:$0xff] %v713_v17  ;;  %v778_v6 = vpack.c.bf16 %v776_v19, %v775_v18  ;;  %v677_v35 = vmul.f32 %v632_v15, %v2016_v53  ;;  %v641_v42 = vmul.f32 %v633_v16, %v1986_v39 }
 0x275   : > { %v615_v26 = vpop.f32.mrf.mxu2  ;;  %v628_v7 = vpop.f32.mrf.mxu3  ;;  %v741_v27 = vpack.c.bf16 %v739_v23, %v738_v22  ;;  %v699_v36 = vpack.c.bf16 %v697_v28, %v1976_v33  ;;  %v721_v37 = vpack.c.bf16 %v719_v31, %v718_v30  ;;  %v678_v43 = vmul.f32 %v633_v16, %v1957_v24 }
 0x276   : > { %782 = vrot.lane.b32.xlu1 %v778_v6, %s1765_s10  ;;  %v679_v38 = vpack.c.bf16 %v677_v35, %v2025_v56  ;;  %v698_v44 = vmul.f32 %v633_v16, %v1974_v32  ;;  %v643_v45 = vpack.c.bf16 %v641_v42, %v641_v42  ;;  %v640_v48 = vmul.f32 %v632_v15, %v2012_v50 }
 0x277   : > { %745 = vrot.lane.b32.xlu0 %v741_v27, %s1763_s8  ;;  %v680_v46 = vpack.c.bf16 %v678_v43, %v678_v43  ;;  %v659_v51 = vpack.c.bf16 %v632_v15, %v1768_v60  ;;  %v660_v52 = vpack.c.bf16 %v633_v16, %v633_v16 }
 0x278   : > { %v700_v47 = vpack.c.bf16 %v698_v44, %v698_v44  ;;  %v642_v49 = vpack.c.bf16 %v640_v48, %v2020_v54 }
 0x27c   : > { %703 = vrot.lane.b32.xlu2 %v699_v36, %s1762_s6 }
 0x27e   : > { %725 = vrot.lane.b32.xlu1 %v721_v37, %s1764_s9 }
 0x27f   : > { %683 = vrot.lane.b32.xlu0 %v679_v38, %s1761_s21 }
 0x284   : > { %648 = vrot.lane.b32.xlu2 %v643_v45, %s1760_s26 }
 0x286   : > { %685 = vrot.lane.b32.xlu1 %v680_v46, %s1761_s21 }
 0x287   : > { %705 = vrot.lane.b32.xlu0 %v700_v47, %s1762_s6 }
 0x28c   : > { %1031 = vrot.lane.b32.xlu2 %v1951_v21, %s1763_s8  ;;  %v785_v21 = vpop.permute.xlu2 %784 }
 0x28e   : > { %646 = vrot.lane.b32.xlu1 %v642_v49, %s1760_s26 }
 0x28f   : > { %663 = vrot.lane.b32.xlu0 %v659_v51, %s1769_s12 }
 0x294   : > { %v728_v57 = vpop.permute.xlu2 %727 }
 0x295   : > { %v730_v26 = vrot.slane %v728_v57, 4  ;;  %v1389_v57 = vld [vmem:[#allocation3 + $0x20] sm:$0xf] }
 0x296   : > { %665 = vrot.lane.b32.xlu1 %v660_v52, %s1769_s12 }
 0x297   : > { %1068 = vrot.lane.b32.xlu0 %v1949_v20, %s1765_s10  ;;  %v787_v20 = vrot.slane %v785_v21, 4 }
 0x29e   : > { %1048 = vrot.lane.b32.xlu1 %v1767_v11, %s1766_s11  ;;  %v750_v11 = vrot.slane %v748_v1, 4 }
 0x29f   : > { %1011 = vrot.lane.b32.xlu0 %v1959_v25, %s1764_s9 }
 0x2ce   : > { %v763_v61 = vpop.permute.xlu2 %762 }
 0x2cf   : > { %v766_v62 = vrot.slane %v763_v61, 4 }
 0x2d1   : > { %v768_v63 = vsel %vm302_vm6, %v766_v62, %v767_v59  ;;  %v1461_v62 = vld [vmem:[#allocation3 + $0x24] sm:$0xf] }
 0x2d2   : > { %v769_v0 = vsel %vm465_vm7, %v763_v61, %v768_v63 }
 0x2d3   : > { %771 = vst [vmem:[#allocation3 + $0x38] sm:$0xff] %v769_v0 }
 0x2d6   : > { %v704_v35 = vpop.permute.xlu2 %703 }
 0x2d7   : > { %v707_v51 = vrot.slane %v704_v35, 4 }
 0x2da   : > { %v1464_v37 = vld [vmem:[#allocation3 + $0x34] sm:$0xf0]  ;;  %v1399_v38 = vld [vmem:[#allocation3 + $0x38] sm:$0xf0] }
 0x2e8   : > { %v783_v3 = vpop.permute.xlu1 %782 }
 0x2e9   : > { %v786_v4 = vrot.slane %v783_v3, 4  ;;  %v746_v5 = vpop.permute.xlu0 %745 }
 0x2ea   : > { %v749_v8 = vrot.slane %v746_v5, 4 }
 0x2eb   : > { %v788_v25 = vsel %vm302_vm6, %v786_v4, %v787_v20  ;;  %v649_v20 = vpop.permute.xlu2 %648 }
 0x2ec   : > { %v789_v15 = vsel %vm284_vm4, %v783_v3, %v788_v25  ;;  %v751_v16 = vsel %vm302_vm6, %v749_v8, %v750_v11 }
 0x2ed   : > { %v752_v17 = vsel %vm336_vm5, %v746_v5, %v751_v16  ;;  %v826_v18 = vunpack.c.l.b16 %v789_v15  ;;  %v827_v19 = vunpack.c.h.b16 %v789_v15  ;;  %v651_v5 = vrot.slane %v649_v20, 4 }
 0x2ee   : > { %754 = vst [vmem:[#allocation3 + $0x30] sm:$0xff] %v752_v17 }
 0x2ef   : > { %v836_v22 = vpack.c.b16 %v826_v18, %v826_v18  ;;  %v837_v23 = vpack.c.b16 %v827_v19, %v827_v19 }
 0x2f0   : > { %v726_v6 = vpop.permute.xlu1 %725 }
 0x2f1   : > { %v729_v7 = vrot.slane %v726_v6, 4  ;;  %v684_v27 = vpop.permute.xlu0 %683  ;;  %v847_v28 = vsel %vm302_vm6, %v836_v22, 0  ;;  %v850_v30 = vsel %vm302_vm6, %v837_v23, 0 }
 0x2f2   : > { %855 = vmatpush.bf16.msrb.mxu2 %v847_v28  ;;  %868 = vmatpush.bf16.msrb.mxu3 %v850_v30  ;;  %v687_v47 = vrot.slane %v684_v27, 4 }
 0x2f3   : > { %v731_v31 = vsel %vm302_vm6, %v729_v7, %v730_v26 }
 0x2f4   : > { %v732_v36 = vsel %vm366_vm1, %v726_v6, %v731_v31 }
 0x2f5   : > { %734 = vst [vmem:[#allocation3 + $0x28] sm:$0xff] %v732_v36  ;;  %v1397_v42 = vld [vmem:[#allocation3 + $0x30] sm:$0xf]  ;;  %v1463_v43 = vld [vmem:[#allocation3 + $0x34] sm:$0xf] }
 0x2f6   : > { %v1398_v44 = vor.u32 %v1464_v37, %v1397_v42  ;;  %v1402_v45 = vor.u32 %v1463_v43, %v1399_v38 }
 0x2f8   : > { %v686_v46 = vpop.permute.xlu1 %685  ;;  %856 = vmatpush.bf16.msrb.mxu2 %v1398_v44  ;;  %869 = vmatpush.bf16.msrb.mxu3 %v1402_v45 }
 0x2f9   : > { %v688_v48 = vrot.slane %v686_v46, 4  ;;  %v706_v49 = vpop.permute.xlu0 %705 }
 0x2fa   : > { %v708_v52 = vrot.slane %v706_v49, 4 }
 0x2fb   : > { %v689_v21 = vsel %vm302_vm6, %v687_v47, %v688_v48 }
 0x2fc   : > { %v690_v58 = vsel %vm355_vm2, %v684_v27, %v689_v21  ;;  %v709_v59 = vsel %vm302_vm6, %v707_v51, %v708_v52  ;;  %v1462_v61 = vld [vmem:[#allocation3 + $0x24] sm:$0xf0]  ;;  %v1391_v63 = vld [vmem:[#allocation3 + $0x28] sm:$0xf0] }
 0x2fd   : > { %692 = vst [vmem:[#allocation3 + $0x10] sm:$0xff] %v690_v58  ;;  %v710_v0 = vsel %vm385_vm3, %v704_v35, %v709_v59  ;;  %v1390_v1 = vor.u32 %v1462_v61, %v1389_v57  ;;  %v1394_v3 = vor.u32 %v1461_v62, %v1391_v63 }
 0x2fe   : > { %712 = vst [vmem:[#allocation3 + $0x18] sm:$0xff] %v710_v0 }
 0x2ff   : > { %857 = vmatpush.bf16.msrb.mxu2 %v1390_v1  ;;  %870 = vmatpush.bf16.msrb.mxu3 %v1394_v3 }
 0x300   : > { %v647_v4 = vpop.permute.xlu1 %646 }
 0x301   : > { %v650_v11 = vrot.slane %v647_v4, 4  ;;  %v664_v19 = vpop.permute.xlu0 %663 }
 0x302   : > { %v667_v26 = vrot.slane %v664_v19, 4 }
 0x303   : > { %v652_v8 = vsel %vm302_vm6, %v650_v11, %v651_v5 }
 0x304   : > { %v653_v25 = vsel %vm304_vm0, %v647_v4, %v652_v8  ;;  %v1381_v15 = vld [vmem:[#allocation3 + $0x10] sm:$0xf]  ;;  %v1459_v16 = vld [vmem:[#allocation3 + $0x14] sm:$0xf] }
 0x305   : > { %655 = vst [vmem:[#allocation3] sm:$0xff] %v653_v25  ;;  %v1460_v17 = vld [vmem:[#allocation3 + $0x14] sm:$0xf0]  ;;  %v1383_v18 = vld [vmem:[#allocation3 + $0x18] sm:$0xf0] }
 0x306   : > { %v1382_v22 = vor.u32 %v1460_v17, %v1381_v15  ;;  %v1386_v23 = vor.u32 %v1459_v16, %v1383_v18 }
 0x308   : > { %858 = vmatpush.bf16.msrb.mxu2 %v1382_v22  ;;  %871 = vmatpush.bf16.msrb.mxu3 %v1386_v23  ;;  %v666_v6 = vpop.permute.xlu1 %665 }
 0x309   : > { %v668_v7 = vrot.slane %v666_v6, 4  ;;  %v1069_v17 = vpop.permute.xlu0 %1068 }
 0x30b   : > { %v669_v27 = vsel %vm302_vm6, %v667_v26, %v668_v7 }
 0x30c   : > { %v670_v28 = vsel %vm322_vm8, %v664_v19, %v669_v27  ;;  %v1373_v30 = vld [vmem:[#allocation3] sm:$0xf]  ;;  %v1457_v35 = vld [vmem:[#allocation3 + $0x4] sm:$0xf]  ;;  %v1071_v19 = vrot.slane %v1069_v17, 4 }
 0x30d   : > { %672 = vst [vmem:[#allocation3 + $0x8] sm:$0xff] %v670_v28 }
 0x311   : > { %v1012_v26 = vpop.permute.xlu0 %1011 }
 0x312   : > { %v1014_v28 = vrot.slane %v1012_v26, 4 }
 0x314   : > { %v1458_v31 = vld [vmem:[#allocation3 + $0x4] sm:$0xf0]  ;;  %v1375_v36 = vld [vmem:[#allocation3 + $0x8] sm:$0xf0] }
 0x315   : > { %v1374_v37 = vor.u32 %v1458_v31, %v1373_v30  ;;  %v1378_v38 = vor.u32 %v1457_v35, %v1375_v36 }
 0x317   : > { %859 = vmatpush.bf16.msrb.mxu2 %v1374_v37  ;;  %872 = vmatpush.bf16.msrb.mxu3 %v1378_v38  ;;  %v1049_v38 = vpop.permute.xlu1 %1048 }
 0x31a   : > { %1403 = vmatmul.msk.bf16.vlgmr.msrb.gmra.mxu2 %vm553_vm9, %v2065_v55  ;;  %1404 = vmatmul.msk.bf16.vlgmr.msrb.gmra.mxu3 %vm553_vm9, %v2065_v55 }
 0x39d   : > { %v861_v42 = vpop.f32.mrf.mxu2  ;;  %v874_v43 = vpop.f32.mrf.mxu3 }
 0x39e   : > { %v878_v44 = vmax.f32 %v861_v42, 0.0  ;;  %v879_v45 = vmax.f32 %v874_v43, 0.0  ;;  %v1051_v43 = vrot.slane %v1049_v38, 4 }
 0x3a0   : > { %v880_v46 = vpack.c.bf16 %v878_v44, %v878_v44  ;;  %v881_v47 = vpack.c.bf16 %v879_v45, %v879_v45 }
 0x3a2   : > { %v883_v48 = vsel %vm302_vm6, %v880_v46, 0  ;;  %v886_v49 = vsel %vm302_vm6, %v881_v47, 0 }
 0x3a3   : > { %895 = vmatpush.bf16.msrb.mxu0 %v883_v48  ;;  %908 = vmatpush.bf16.msrb.mxu1 %v886_v49 }
 0x3a5   : > { %v863_v51 = vpop.f32.mrf.mxu2  ;;  %v876_v52 = vpop.f32.mrf.mxu3 }
 0x3a6   : > { %1405 = vmatmul.msk.bf16.vlgmr.msrb.gmra.mxu0 %vm594_vm10, %v2073_v2  ;;  %1406 = vmatmul.msk.bf16.vlgmr.msrb.gmra.mxu1 %vm594_vm10, %v2073_v2 }
 0x423   : > { %v897_v21 = vpop.f32.mrf.mxu0  ;;  %v910_v57 = vpop.f32.mrf.mxu1 }
 0x424   : > { %v2152_v58 = vadd.f32 %v897_v21, %v2080_v9  ;;  %v2155_v59 = vadd.f32 %v910_v57, %v2083_v10 }
 0x426   : > { %v916_v61 = vmax.f32 %v2152_v58, 0.0  ;;  %v917_v62 = vmax.f32 %v2155_v59, 0.0 }
 0x428   : > { %v997_v63 = vpack.c.bf16 %v917_v62, %v916_v61  ;;  %v1059_v0 = vmul.f32 %v916_v61, %v1945_v13  ;;  %v1060_v1 = vmul.f32 %v917_v62, %v1965_v29  ;;  %v1022_v3 = vmul.f32 %v916_v61, %v1947_v14 }
 0x429   : > { %v1023_v20 = vmul.f32 %v917_v62, %v1990_v40  ;;  %v981_v11 = vmul.f32 %v916_v61, %v1980_v34  ;;  %v1002_v13 = vmul.f32 %v916_v61, %v1943_v12  ;;  %v1003_v29 = vmul.f32 %v917_v62, %v1994_v41 }
 0x42a   : > { %1046 = vrot.lane.b32.xlu0 %v997_v63, %s1766_s11  ;;  %998 = vst [vmem:[#allocation3 + $0x20] sm:$0xff] %v997_v63  ;;  %v1062_v9 = vpack.c.bf16 %v1060_v1, %v1059_v0  ;;  %v961_v14 = vmul.f32 %v916_v61, %v2016_v53  ;;  %v925_v15 = vmul.f32 %v917_v62, %v1986_v39 }
 0x42b   : > { %v899_v4 = vpop.f32.mrf.mxu0  ;;  %v912_v10 = vpop.f32.mrf.mxu1  ;;  %v1025_v5 = vpack.c.bf16 %v1023_v20, %v1022_v3  ;;  %v983_v40 = vpack.c.bf16 %v981_v11, %v1976_v33  ;;  %v1005_v8 = vpack.c.bf16 %v1003_v29, %v1002_v13  ;;  %v962_v34 = vmul.f32 %v917_v62, %v1957_v24 }
 0x42c   : > { %1066 = vrot.lane.b32.xlu2 %v1062_v9, %s1765_s10  ;;  %v963_v25 = vpack.c.bf16 %v961_v14, %v2025_v56  ;;  %v982_v12 = vmul.f32 %v917_v62, %v1974_v32  ;;  %v927_v41 = vpack.c.bf16 %v925_v15, %v925_v15  ;;  %v924_v56 = vmul.f32 %v916_v61, %v2012_v50  ;;  %v1032_v32 = vpop.permute.xlu2 %1031 }
 0x42d   : > { %1029 = vrot.lane.b32.xlu1 %v1025_v5, %s1763_s8  ;;  %v964_v53 = vpack.c.bf16 %v962_v34, %v962_v34  ;;  %v943_v39 = vpack.c.bf16 %v916_v61, %v1768_v60  ;;  %v944_v24 = vpack.c.bf16 %v917_v62, %v917_v62  ;;  %v1034_v47 = vrot.slane %v1032_v32, 4 }
 0x42e   : > { %v984_v33 = vpack.c.bf16 %v982_v12, %v982_v12  ;;  %v926_v16 = vpack.c.bf16 %v924_v56, %v2020_v54 }
 0x432   : > { %987 = vrot.lane.b32.xlu0 %v983_v40, %s1762_s6 }
 0x434   : > { %1009 = vrot.lane.b32.xlu2 %v1005_v8, %s1764_s9 }
 0x435   : > { %967 = vrot.lane.b32.xlu1 %v963_v25, %s1761_s21  ;;  %v1425_v25 = vld [vmem:[#allocation3 + $0x20] sm:$0xf] }
 0x43a   : > { %932 = vrot.lane.b32.xlu0 %v927_v41, %s1760_s26  ;;  %v1469_v41 = vld [vmem:[#allocation3 + $0x24] sm:$0xf] }
 0x43c   : > { %969 = vrot.lane.b32.xlu2 %v964_v53, %s1761_s21 }
 0x43d   : > { %989 = vrot.lane.b32.xlu1 %v984_v33, %s1762_s6 }
 0x444   : > { %930 = vrot.lane.b32.xlu2 %v926_v16, %s1760_s26  ;;  %s1695_s26 = sshra.s32 %s1221_s7, 4  ;;  %s1696_s26 = int_to_ptr.hbm [resolvable:$true] %s1695_s26 }
 0x445   : > { %947 = vrot.lane.b32.xlu1 %v943_v39, %s1769_s12  ;;  %s1697_s21 = scalar_lea.hbm %s1696_s26, 16  ;;  %p1702_p9 = scmp.lt.s32.totalorder %s1696_s26, %s2256_s4 }
 0x446   : > { %p1698_p1 = scmp.ne.s32.totalorder %s1696_s26, %s1697_s21  ;;  %p1703_p10 = scmp.lt.s32.totalorder %s1701_s30, %s1697_s21 }
 0x448   : > { %p1699_p4 = pnand %p1698_p1, %p1867_p3  ;;  %p1704_p2 = por %p1703_p10, %p1702_p9 }
 0x44a   : > { %p1700_p8 = pneg %p1699_p4 }
 0x44c   : > { %949 = vrot.lane.b32.xlu2 %v944_v24, %s1769_s12  ;;  %p1705_p11 = pnand %p1704_p2, %p1700_p8 }
 0x486   : > { %v1067_v18 = vpop.permute.xlu2 %1066 }
 0x487   : > { %v1070_v22 = vrot.slane %v1067_v18, 4 }
 0x489   : > { %v1072_v23 = vsel %vm302_vm6, %v1070_v22, %v1071_v19 }
 0x48a   : > { %v1073_v50 = vsel %vm284_vm4, %v1067_v18, %v1072_v23 }
 0x48b   : > { %v1110_v6 = vunpack.c.l.b16 %v1073_v50  ;;  %v1111_v54 = vunpack.c.h.b16 %v1073_v50 }
 0x48d   : > { %v1120_v60 = vpack.c.b16 %v1110_v6, %v1110_v6  ;;  %v1121_v7 = vpack.c.b16 %v1111_v54, %v1111_v54 }
 0x48e   : > { %v1010_v27 = vpop.permute.xlu2 %1009 }
 0x48f   : > { %v1013_v30 = vrot.slane %v1010_v27, 4  ;;  %v1131_v31 = vsel %vm302_vm6, %v1120_v60, 0  ;;  %v1134_v35 = vsel %vm302_vm6, %v1121_v7, 0 }
 0x490   : > { %1139 = vmatpush.bf16.msra.mxu2 %v1131_v31  ;;  %1152 = vmatpush.bf16.msra.mxu3 %v1134_v35 }
 0x491   : > { %v1015_v36 = vsel %vm302_vm6, %v1013_v30, %v1014_v28 }
 0x492   : > { %v1016_v37 = vsel %vm366_vm1, %v1010_v27, %v1015_v36 }
 0x493   : > { %1018 = vst [vmem:[#allocation3 + $0x28] sm:$0xff] %v1016_v37 }
 0x496   : > { %v970_v48 = vpop.permute.xlu2 %969 }
 0x497   : > { %v972_v62 = vrot.slane %v970_v48, 4 }
 0x49a   : > { %v1470_v29 = vld [vmem:[#allocation3 + $0x24] sm:$0xf0]  ;;  %v1427_v8 = vld [vmem:[#allocation3 + $0x28] sm:$0xf0] }
 0x49b   : > { %v1426_v12 = vor.u32 %v1470_v29, %v1425_v25  ;;  %v1430_v16 = vor.u32 %v1469_v41, %v1427_v8 }
 0x49c   : > { %v1047_v42 = vpop.permute.xlu0 %1046 }
 0x49d   : > { %v1050_v44 = vrot.slane %v1047_v42, 4 }
 0x49e   : > { %v931_v0 = vpop.permute.xlu2 %930 }
 0x49f   : > { %v1052_v45 = vsel %vm302_vm6, %v1050_v44, %v1051_v43  ;;  %v1030_v46 = vpop.permute.xlu1 %1029  ;;  %v934_v14 = vrot.slane %v931_v0, 4 }
 0x4a0   : > { %v1053_v49 = vsel %vm465_vm7, %v1047_v42, %v1052_v45  ;;  %v1033_v51 = vrot.slane %v1030_v46, 4 }
 0x4a1   : > { %1055 = vst [vmem:[#allocation3 + $0x38] sm:$0xff] %v1053_v49 }
 0x4a2   : > { %v1035_v52 = vsel %vm302_vm6, %v1033_v51, %v1034_v47 }
 0x4a3   : > { %v1036_v21 = vsel %vm336_vm5, %v1030_v46, %v1035_v52 }
 0x4a4   : > { %1038 = vst [vmem:[#allocation3 + $0x30] sm:$0xff] %v1036_v21  ;;  %v988_v57 = vpop.permute.xlu0 %987 }
 0x4a5   : > { %v991_v53 = vrot.slane %v988_v57, 4 }
 0x4a6   : > { %v950_v32 = vpop.permute.xlu2 %949 }
 0x4a7   : > { %v968_v61 = vpop.permute.xlu1 %967  ;;  %v952_v18 = vrot.slane %v950_v32, 4 }
 0x4a8   : > { %v971_v63 = vrot.slane %v968_v61, 4  ;;  %v1472_v3 = vld [vmem:[#allocation3 + $0x34] sm:$0xf0]  ;;  %v1435_v10 = vld [vmem:[#allocation3 + $0x38] sm:$0xf0] }
 0x4aa   : > { %v973_v1 = vsel %vm302_vm6, %v971_v63, %v972_v62 }
 0x4ab   : > { %v974_v20 = vsel %vm355_vm2, %v968_v61, %v973_v1  ;;  %v1433_v9 = vld [vmem:[#allocation3 + $0x30] sm:$0xf]  ;;  %v1471_v4 = vld [vmem:[#allocation3 + $0x34] sm:$0xf] }
 0x4ac   : > { %976 = vst [vmem:[#allocation3 + $0x10] sm:$0xff] %v974_v20  ;;  %v933_v5 = vpop.permute.xlu0 %932  ;;  %v1434_v11 = vor.u32 %v1472_v3, %v1433_v9  ;;  %v1438_v13 = vor.u32 %v1471_v4, %v1435_v10 }
 0x4ad   : > { %v935_v40 = vrot.slane %v933_v5, 4 }
 0x4ae   : > { %1140 = vmatpush.bf16.msra.mxu2 %v1434_v11  ;;  %1153 = vmatpush.bf16.msra.mxu3 %v1438_v13 }
 0x4af   : > { %v936_v15 = vsel %vm302_vm6, %v934_v14, %v935_v40  ;;  %v990_v34 = vpop.permute.xlu1 %989 }
 0x4b0   : > { %v937_v33 = vsel %vm304_vm0, %v931_v0, %v936_v15  ;;  %v992_v56 = vrot.slane %v990_v34, 4 }
 0x4b1   : > { %939 = vst [vmem:[#allocation3] sm:$0xff] %v937_v33 }
 0x4b2   : > { %v993_v39 = vsel %vm302_vm6, %v991_v53, %v992_v56  ;;  %1141 = vmatpush.bf16.msra.mxu2 %v1426_v12  ;;  %1154 = vmatpush.bf16.msra.mxu3 %v1430_v16 }
 0x4b3   : > { %v994_v24 = vsel %vm385_vm3, %v988_v57, %v993_v39  ;;  %v1417_v23 = vld [vmem:[#allocation3 + $0x10] sm:$0xf]  ;;  %v1467_v54 = vld [vmem:[#allocation3 + $0x14] sm:$0xf] }
 0x4b4   : > { %996 = vst [vmem:[#allocation3 + $0x18] sm:$0xff] %v994_v24 }
 0x4b7   : > { %v948_v17 = vpop.permute.xlu1 %947 }
 0x4b8   : > { %v951_v19 = vrot.slane %v948_v17, 4  ;;  %v1409_v27 = vld [vmem:[#allocation3] sm:$0xf]  ;;  %v1465_v30 = vld [vmem:[#allocation3 + $0x4] sm:$0xf] }
 0x4ba   : > { %v953_v22 = vsel %vm302_vm6, %v951_v19, %v952_v18 }
 0x4bb   : > { %v954_v50 = vsel %vm322_vm8, %v948_v17, %v953_v22  ;;  %v1468_v6 = vld [vmem:[#allocation3 + $0x14] sm:$0xf0]  ;;  %v1419_v26 = vld [vmem:[#allocation3 + $0x18] sm:$0xf0] }
 0x4bc   : > { %956 = vst [vmem:[#allocation3 + $0x8] sm:$0xff] %v954_v50  ;;  %v1418_v60 = vor.u32 %v1468_v6, %v1417_v23  ;;  %v1422_v7 = vor.u32 %v1467_v54, %v1419_v26 }
 0x4be   : > { %1142 = vmatpush.bf16.msra.mxu2 %v1418_v60  ;;  %1155 = vmatpush.bf16.msra.mxu3 %v1422_v7 }
 0x4c3   : > { %v1466_v28 = vld [vmem:[#allocation3 + $0x4] sm:$0xf0]  ;;  %v1411_v31 = vld [vmem:[#allocation3 + $0x8] sm:$0xf0] }
 0x4c4   : > { %v1410_v35 = vor.u32 %v1466_v28, %v1409_v27  ;;  %v1414_v36 = vor.u32 %v1465_v30, %v1411_v31 }
 0x4c6   : > { %1143 = vmatpush.bf16.msra.mxu2 %v1410_v35  ;;  %1156 = vmatpush.bf16.msra.mxu3 %v1414_v36 }
 0x4c9   : > { %1439 = vmatmul.msk.bf16.vlgmr.msra.gmra.mxu2 %vm553_vm9, %v2065_v55  ;;  %1440 = vmatmul.msk.bf16.vlgmr.msra.gmra.mxu3 %vm553_vm9, %v2065_v55 }
 0x54c   : > { %v1145_v37 = vpop.f32.mrf.mxu2  ;;  %v1158_v38 = vpop.f32.mrf.mxu3 }
 0x54d   : > { %v1162_v42 = vmax.f32 %v1145_v37, 0.0  ;;  %v1163_v43 = vmax.f32 %v1158_v38, 0.0 }
 0x54f   : > { %v1164_v44 = vpack.c.bf16 %v1162_v42, %v1162_v42  ;;  %v1165_v45 = vpack.c.bf16 %v1163_v43, %v1163_v43 }
 0x551   : > { %v1167_v46 = vsel %vm302_vm6, %v1164_v44, 0  ;;  %v1170_v47 = vsel %vm302_vm6, %v1165_v45, 0 }
 0x552   : > { %1179 = vmatpush.bf16.msra.mxu0 %v1167_v46  ;;  %1192 = vmatpush.bf16.msra.mxu1 %v1170_v47 }
 0x554   : > { %v1147_v48 = vpop.f32.mrf.mxu2  ;;  %v1160_v49 = vpop.f32.mrf.mxu3 }
 0x555   : > { %1441 = vmatmul.msk.bf16.vlgmr.msra.gmra.mxu0 %vm594_vm10, %v2073_v2  ;;  %1442 = vmatmul.msk.bf16.vlgmr.msra.gmra.mxu1 %vm594_vm10, %v2073_v2 }
 0x5d2   : > { %v1181_v55 = vpop.f32.mrf.mxu0  ;;  %v1194_v51 = vpop.f32.mrf.mxu1 }
 0x5d3   : > { %v1198_v52 = vadd.f32 %v1181_v55, %v2152_v58  ;;  %v1199_v21 = vadd.f32 %v1194_v51, %v2155_v59 }
 0x5d5   : > { %v1200_v57 = vmax.f32 %v1198_v52, 0.0  ;;  %v1201_v61 = vmax.f32 %v1199_v21, 0.0 }
 0x5d7   : > { %1202 = vst [vmem:[%s259_s29] sm:$0xff] %v1200_v57 }
 0x5d8   : > { %1203 = vst [vmem:[%s259_s29 + $0x8] sm:$0xff] %v1201_v61 }
 0x5d9   : > { %1708 = shalt.err (!%p1705_p11)
}
 0x5da   : > { %1488 = dma.vmem_to_hbm [thread:$0]  (%p1867_p3), %s1219_s5, 256, %s1221_s7, %s1205_s19   ;;  %v1183_v2 = vpop.f32.mrf.mxu0  ;;  %v1196_v58 = vpop.f32.mrf.mxu1 }
 0x5db PF: > { %s1232_s25 = sand.u32 1, %s1743_s15   ;;  %p2262_p12 = scmp.ge.s32.totalorder %s1755_s18, 2 }
 0x5dc   : > { %s1233_s11 = scalar_lea.sflag [#allocation6], %s1232_s25 }
 0x5dd   : > { %p1505_p13 = pnand %p2262_p12, %p1830_p6 }
 0x5df   : > { %p1506_p0 = pneg %p1505_p13 }
 0x5e1   : > { %1738 = dma.done.wait (%p1506_p0), %s1233_s11, 256  }
 0x5e2   : > { %1740 = vsyncadd (%p1506_p0), %s1233_s11, 4294967040  ;;  %p19_p3 = scmp.ge.s32.totalorder %s1854_s13, 4   ;;  %s2263_s15 = smov %s1747_s16 }
 0x5e3   : > { %s2264_s16 = smov %s1751_s17  ;;  %s2265_s17 = smov %s1863_s23 }
 0x5e4   : > { %s2266_s18 = smov %s1854_s13  ;;  %21 = sbr.rel (!%p19_p3) target bundleno = 7 (0x7), region = 94 }
 0x5e9   :  { %1239 = vsyncpa [#allocation5], 1 }
 0x5ea   :  { %1241 = vsyncpa [#allocation5 + $0x1], 1 }
 0x5eb   :  { %1242 = vsyncpa [#allocation8], 1 }
 0x5ec   :  { %1243 = vsyncpa [#allocation11], 1 }
 0x5ed   :  { %1244 = vsyncpa [#allocation6], 1 }
 0x5ee   :  { %1246 = vsyncpa [#allocation6 + $0x1], 1 }

</bundles_post_ra>
